<compile_context>
chip_gen: v7x
topology: tpu7x:2x2x1
jax: 0.10.0
libtpu: 0.0.40
codegen_flags: <defaults>
</compile_context>

<pallas_src>
import functools

import jax
import jax.numpy as jnp
from jax import lax
from jax.experimental import pallas as pl
from jax.experimental.pallas import tpu as pltpu


# Layer hyper-parameters fixed by the PyTorch module.
K1, S1, C1OUT = 8, 4, 16          # conv1: 8x8 kernel, stride 4, 16 channels
K2, S2, C2OUT = 4, 2, 32          # conv2: 4x4 kernel, stride 2, 32 channels


def conv_output_hw(h, w, k, s):
    return (h - k) // s + 1, (w - k) // s + 1


def _round_up(a, m):
    return (a + m - 1) // m * m


def _pick_batch_tile(n):
    """Batch-tile size: big enough to amortize the ~0.35us/grid-step overhead, small
    enough for VMEM, and >=2 tiles whenever possible so the 'parallel' batch axis can
    shard across TensorCores (v7x megacore)."""
    if n <= 8:
        return _round_up(max(n, 1), 8)
    if n <= 256:
        return _round_up((n + 1) // 2, 8)              # exactly two tiles
    return 256 if (n % 256 == 0 or n % 256 >= 128) else 128


# ---------------------------------------------------------------------------
# Fused forward kernel: one grid step = one batch tile of `tb` samples.
#   p1_ref : (ho1*wo1*tb, C*K1*K1) bf16 conv1 im2col patches, rows ordered (h1, w1, n)
#   c1_ref : VMEM f32 scratch, same row order, 16 lanes (conv1 activations)
#   x2_ref : VMEM bf16 scratch (P2*tb, 256) conv2 im2col, rows (p2, n), feats (kh, kw, c)
# ---------------------------------------------------------------------------
def _vqn_fused_kernel(p1_ref, w1m_ref, b1_ref, w2m_ref, b2_ref,
                      d1w_ref, d1b_ref, d2w_ref, d2b_ref,
                      out_ref, c1_ref, x2_ref, *,
                      tb, wo1, ho2, wo2):
    # ---- conv1 + ReLU: ONE bf16 MXU matmul over the whole patch block -------
    c1 = jnp.dot(p1_ref[...], w1m_ref[...], preferred_element_type=jnp.float32)
    c1 = jnp.maximum(c1 + b1_ref[...], 0.0)
    c1_ref[...] = c1.astype(c1_ref.dtype)              # one full-width store

    p2n = ho2 * wo2

    # ---- conv2 im2col: lane-offset-0 contiguous slices of c1, concatenated in
    # registers and written as full 256-lane aligned rows (bf16). ------------
    for h2 in range(ho2):
        for w2 in range(wo2):
            p = h2 * wo2 + w2
            pieces = []
            for kh in range(K2):
                for kw in range(K2):
                    r0 = ((h2 * S2 + kh) * wo1 + (w2 * S2 + kw)) * tb  # static
                    pieces.append(c1_ref[r0:r0 + tb, :])               # (tb, 16) f32
            x2_ref[p * tb:(p + 1) * tb, :] = jnp.concatenate(
                pieces, axis=1).astype(x2_ref.dtype)                   # (tb, 256)

    # ---- conv2 + ReLU: ONE (P2*tb, 256) x (256, 32) bf16 matmul (K=256) -----
    c2 = jnp.dot(x2_ref[...], w2m_ref[...], preferred_element_type=jnp.float32)
    c2 = jnp.maximum(c2 + b2_ref[...], 0.0)                            # (P2*tb, 32) f32

    # ---- dense1 + ReLU: per-sample flatten = lane-concat of the P2 rows -----
    # (PyTorch channel-major flatten order is folded into d1w host-side.)
    h_in = jnp.concatenate([c2[p * tb:(p + 1) * tb, :] for p in range(p2n)],
                           axis=1)                                     # (tb, P2*32)
    hid = jnp.maximum(jnp.dot(h_in.astype(jnp.bfloat16), d1w_ref[...],
                              preferred_element_type=jnp.float32)
                      + d1b_ref[...], 0.0)                             # (tb, enc) f32

    # ---- dense2 (linear head) ------------------------------------------------
    out_ref[...] = (jnp.dot(hid.astype(jnp.bfloat16), d2w_ref[...],
                            preferred_element_type=jnp.float32)
                    + d2b_ref[...]).astype(out_ref.dtype)


# ---------------------------------------------------------------------------
# Host-side glue
# ---------------------------------------------------------------------------
def _im2col_conv1(x, ho, wo, tb):
    """x: (Np, C, H, W) f32 -> (Np//tb * ho*wo*tb, C*K1*K1) bf16.

    Within each batch tile rows are ordered (h1, w1, n); features are in the
    PyTorch Conv2d order (cin, kh, kw).  Pure XLA data movement; bf16 output
    halves the dominant HBM stream into the kernel.
    """
    np_, c, _, _ = x.shape
    f1 = c * K1 * K1
    cols = []
    for i in range(K1):
        for j in range(K1):
            cols.append(x[:, :, i:i + S1 * (ho - 1) + 1:S1,
                          j:j + S1 * (wo - 1) + 1:S1])          # (Np, C, ho, wo)
    p = jnp.stack(cols, axis=2)                                 # (Np, C, K1*K1, ho, wo)
    p = jnp.transpose(p, (0, 3, 4, 1, 2))                       # (Np, ho, wo, C, K1*K1)
    p = p.reshape(np_ // tb, tb, ho, wo, f1)
    p = jnp.transpose(p, (0, 2, 3, 1, 4))                       # (ntiles, ho, wo, tb, f1)
    return p.reshape(np_ // tb * ho * wo * tb, f1).astype(jnp.bfloat16)


def visual_q_network_forward(kparams, visual_obs):
    """visual_obs: (N, C, H, W) float32 (NCHW, matching PyTorch)."""
    n, c, h, w = visual_obs.shape
    ho1, wo1 = conv_output_hw(h, w, K1, S1)
    ho2, wo2 = conv_output_hw(ho1, wo1, K2, S2)
    f1 = c * K1 * K1
    f2 = K2 * K2 * C1OUT
    p2 = ho2 * wo2
    enc = kparams["d1w"].shape[1]
    out_size = kparams["d2w"].shape[1]

    tb = _pick_batch_tile(n)
    np_ = _round_up(n, tb)
    ntiles = np_ // tb
    if np_ != n:
        visual_obs = jnp.pad(visual_obs,
                             ((0, np_ - n), (0, 0), (0, 0), (0, 0)))

    patches = _im2col_conv1(visual_obs, ho1, wo1, tb)   # (ntiles*rows_tile, f1) bf16
    rows_tile = ho1 * wo1 * tb

    kernel = functools.partial(_vqn_fused_kernel, tb=tb, wo1=wo1,
                               ho2=ho2, wo2=wo2)

    flops = 2 * np_ * (ho1 * wo1 * f1 * C1OUT
                       + p2 * f2 * C2OUT
                       + p2 * C2OUT * enc
                       + enc * out_size)
    bytes_accessed = (int(patches.size) * 2
                      + sum(int(v.size) * v.dtype.itemsize
                            for v in kparams.values())
                      + np_ * out_size * 4)

    out = pl.pallas_call(
        kernel,
        out_shape=jax.ShapeDtypeStruct((np_, out_size), jnp.float32),
        grid=(ntiles,),
        in_specs=[
            pl.BlockSpec((rows_tile, f1), lambda i: (i, 0)),     # bf16 patches
            pl.BlockSpec((f1, C1OUT), lambda i: (0, 0)),         # w1m  bf16
            pl.BlockSpec((1, C1OUT), lambda i: (0, 0)),          # b1   f32
            pl.BlockSpec((f2, C2OUT), lambda i: (0, 0)),         # w2m  bf16
            pl.BlockSpec((1, C2OUT), lambda i: (0, 0)),          # b2   f32
            pl.BlockSpec((p2 * C2OUT, enc), lambda i: (0, 0)),   # d1w  bf16
            pl.BlockSpec((1, enc), lambda i: (0, 0)),            # d1b  f32
            pl.BlockSpec((enc, out_size), lambda i: (0, 0)),     # d2w  bf16
            pl.BlockSpec((1, out_size), lambda i: (0, 0)),       # d2b  f32
        ],
        out_specs=pl.BlockSpec((tb, out_size), lambda i: (i, 0)),
        scratch_shapes=[
            pltpu.VMEM((rows_tile, C1OUT), jnp.float32),         # conv1 activations
            pltpu.VMEM((p2 * tb, f2), jnp.bfloat16),             # conv2 im2col
        ],
        compiler_params=pltpu.CompilerParams(
            dimension_semantics=("parallel",),
            vmem_limit_bytes=48 * 1024 * 1024),
        cost_estimate=pl.CostEstimate(flops=flops, transcendentals=0,
                                      bytes_accessed=bytes_accessed),
    )(patches, kparams["w1m"], kparams["b1"], kparams["w2m"], kparams["b2"],
      kparams["d1w"], kparams["d1b"], kparams["d2w"], kparams["d2b"])
    return out[:n]


# ---------------------------------------------------------------------------
# Parameters (synthetic, PyTorch layout) + one-time kernel-layout preparation
# ---------------------------------------------------------------------------
def visual_q_network_init(key, input_shape, encoding_size, output_size):
    c, h, w = input_shape
    h1, w1 = conv_output_hw(h, w, K1, S1)
    h2, w2 = conv_output_hw(h1, w1, K2, S2)
    final_flat = h2 * w2 * C2OUT
    ks = jax.random.split(key, 8)

    def init(k, shape, fan_in):
        bound = 1.0 / jnp.sqrt(float(fan_in))
        return jax.random.uniform(k, shape, jnp.float32, -bound, bound)

    return {
        "conv1_w": init(ks[0], (C1OUT, c, K1, K1), c * K1 * K1),
        "conv1_b": init(ks[1], (C1OUT,), c * K1 * K1),
        "conv2_w": init(ks[2], (C2OUT, C1OUT, K2, K2), C1OUT * K2 * K2),
        "conv2_b": init(ks[3], (C2OUT,), C1OUT * K2 * K2),
        "dense1_w": init(ks[4], (final_flat, encoding_size), final_flat),
        "dense1_b": init(ks[5], (encoding_size,), final_flat),
        "dense2_w": init(ks[6], (encoding_size, output_size), encoding_size),
        "dense2_b": init(ks[7], (output_size,), encoding_size),
    }


def prepare_kernel_params(params, input_shape, encoding_size, output_size):
    """One-time re-layout of PyTorch-layout weights into kernel-ready form."""
    c, h, w = input_shape
    h1, w1 = conv_output_hw(h, w, K1, S1)
    h2, w2 = conv_output_hw(h1, w1, K2, S2)
    p2 = h2 * w2
    return {
        # conv1: (Cout, Cin, kh, kw) -> (Cin*kh*kw, Cout), rows = (cin, kh, kw)
        "w1m": params["conv1_w"].reshape(C1OUT, -1).T.astype(jnp.bfloat16),
        "b1": params["conv1_b"].reshape(1, C1OUT),
        # conv2: -> (kh*kw*Cin, Cout) matching the in-kernel (kh, kw, c) concat order
        "w2m": jnp.transpose(params["conv2_w"], (2, 3, 1, 0)
                             ).reshape(K2 * K2 * C1OUT, C2OUT).astype(jnp.bfloat16),
        "b2": params["conv2_b"].reshape(1, C2OUT),
        # dense1: kernel flatten order is (p2, c2); PyTorch is channel-major (c2, p2)
        "d1w": jnp.transpose(params["dense1_w"].reshape(C2OUT, p2, encoding_size),
                             (1, 0, 2)).reshape(p2 * C2OUT,
                                                encoding_size).astype(jnp.bfloat16),
        "d1b": params["dense1_b"].reshape(1, encoding_size),
        "d2w": params["dense2_w"].astype(jnp.bfloat16),
        "d2b": params["dense2_b"].reshape(1, output_size),
    }


# ---------------------------------------------------------------------------
# Pure-XLA reference of the PyTorch forward.
#   quantize=False : exact f32 PyTorch semantics (loose end-to-end accuracy check).
#   quantize=True  : bf16-rounds every matmul operand exactly where the kernel does,
#                    so it matches the kernel to accumulation-order noise -- a tight
#                    structural check that would catch any layout/permutation bug.
# ---------------------------------------------------------------------------
def visual_q_network_reference(params, x, quantize=False):
    q = ((lambda a: a.astype(jnp.bfloat16).astype(jnp.float32)) if quantize
         else (lambda a: a))
    dn = ("NCHW", "OIHW", "NCHW")
    hp = lax.Precision.HIGHEST
    c1 = lax.conv_general_dilated(q(x), q(params["conv1_w"]), (S1, S1), "VALID",
                                  dimension_numbers=dn, precision=hp)
    c1 = jnp.maximum(c1 + params["conv1_b"][None, :, None, None], 0.0)
    c2 = lax.conv_general_dilated(q(c1), q(params["conv2_w"]), (S2, S2), "VALID",
                                  dimension_numbers=dn, precision=hp)
    c2 = jnp.maximum(c2 + params["conv2_b"][None, :, None, None], 0.0)
    flat = c2.reshape(c2.shape[0], -1)
    hid = jnp.maximum(jnp.dot(q(flat), q(params["dense1_w"]), precision=hp)
                      + params["dense1_b"], 0.0)
    return jnp.dot(q(hid), q(params["dense2_w"]), precision=hp) + params["dense2_b"]


if __name__ == "__main__":
    batch = 2
    input_shape = (3, 32, 32)     # (C, H, W) as in the PyTorch module
    encoding_size = 32
    output_size = 8

    key = jax.random.PRNGKey(0)
    pkey, xkey = jax.random.split(key)

    params = visual_q_network_init(pkey, input_shape, encoding_size, output_size)
    kparams = prepare_kernel_params(params, input_shape, encoding_size, output_size)
    x = jax.random.normal(xkey, (batch,) + input_shape, dtype=jnp.float32)

    fwd = jax.jit(visual_q_network_forward)
    out = fwd(kparams, x)
    jax.block_until_ready(out)

    assert out.shape == (batch, output_size), out.shape
    assert out.dtype == jnp.float32

    # Tight structural check vs. the bf16-operand-quantized reference: any feature
    # permutation / layout bug would produce O(0.1-1) errors; only f32 accumulation-order
    # noise (plus rare 1-ulp bf16 rounding-boundary flips) remains below this tolerance.
    ref_q = visual_q_network_reference(params, x, quantize=True)
    assert bool(jnp.allclose(out, ref_q, rtol=5e-3, atol=5e-3)), (out, ref_q)

    # Loose end-to-end accuracy check vs. the exact f32 PyTorch semantics (tolerance
    # sized for bf16 operand rounding on the four matmuls).
    ref = visual_q_network_reference(params, x, quantize=False)
    assert bool(jnp.allclose(out, ref, rtol=3e-2, atol=3e-2)), (out, ref)

    print("KERNEL_OK")
</pallas_src>

<mosaic_0001>
module attributes {stable_mosaic.version = 11 : i64} {
  func.func @_vqn_fused_kernel(%arg0: i32, %arg1: memref<392x192xbf16, #tpu.memory_space<vmem>>, %arg2: memref<192x16xbf16, #tpu.memory_space<vmem>>, %arg3: memref<1x16xf32, #tpu.memory_space<vmem>>, %arg4: memref<256x32xbf16, #tpu.memory_space<vmem>>, %arg5: memref<1x32xf32, #tpu.memory_space<vmem>>, %arg6: memref<128x32xbf16, #tpu.memory_space<vmem>>, %arg7: memref<1x32xf32, #tpu.memory_space<vmem>>, %arg8: memref<32x8xbf16, #tpu.memory_space<vmem>>, %arg9: memref<1x8xf32, #tpu.memory_space<vmem>>, %arg10: memref<8x8xf32, #tpu.memory_space<vmem>>, %arg11: memref<392x16xf32, #tpu.memory_space<vmem>>, %arg12: memref<32x256xbf16, #tpu.memory_space<vmem>>) attributes {dimension_semantics = [#tpu.dimension_semantics<parallel>], iteration_bounds = array<i64: 1>, scalar_prefetch = 0 : i64, scratch_operands = 2 : i64, tpu.core_type = #tpu.core_type<tc>, window_params = [{transform_indices = @transform_0, window_bounds = array<i64: 392, 192>}, {pipeline_mode = #tpu.pipeline_mode<synchronous>, transform_indices = @transform_1, window_bounds = array<i64: 192, 16>}, {pipeline_mode = #tpu.pipeline_mode<synchronous>, transform_indices = @transform_2, window_bounds = array<i64: 1, 16>}, {pipeline_mode = #tpu.pipeline_mode<synchronous>, transform_indices = @transform_3, window_bounds = array<i64: 256, 32>}, {pipeline_mode = #tpu.pipeline_mode<synchronous>, transform_indices = @transform_4, window_bounds = array<i64: 1, 32>}, {pipeline_mode = #tpu.pipeline_mode<synchronous>, transform_indices = @transform_5, window_bounds = array<i64: 128, 32>}, {pipeline_mode = #tpu.pipeline_mode<synchronous>, transform_indices = @transform_6, window_bounds = array<i64: 1, 32>}, {pipeline_mode = #tpu.pipeline_mode<synchronous>, transform_indices = @transform_7, window_bounds = array<i64: 32, 8>}, {pipeline_mode = #tpu.pipeline_mode<synchronous>, transform_indices = @transform_8, window_bounds = array<i64: 1, 8>}, {transform_indices = @transform_9, window_bounds = array<i64: 8, 8>}]} {
    %c0 = arith.constant 0 : index
    %c0_0 = arith.constant 0 : index
    %0 = vector.load %arg1[%c0, %c0_0] : memref<392x192xbf16, #tpu.memory_space<vmem>>, vector<392x192xbf16>
    %c0_1 = arith.constant 0 : index
    %c0_2 = arith.constant 0 : index
    %1 = vector.load %arg2[%c0_1, %c0_2] : memref<192x16xbf16, #tpu.memory_space<vmem>>, vector<192x16xbf16>
    %cst = arith.constant dense<0.000000e+00> : vector<392x16xf32>
    %2 = tpu.matmul %0, %1, %cst {dimension_numbers = #tpu.dot_dimension_numbers<[1], [0], [0], [1], [0, 0, 1, 1], [], []>} : vector<392x192xbf16>, vector<192x16xbf16>, vector<392x16xf32> -> vector<392x16xf32>
    %c0_3 = arith.constant 0 : index
    %c0_4 = arith.constant 0 : index
    %3 = vector.load %arg3[%c0_3, %c0_4] : memref<1x16xf32, #tpu.memory_space<vmem>>, vector<1x16xf32>
    %4 = vector.broadcast %3 : vector<1x16xf32> to vector<392x16xf32>
    %5 = arith.addf %2, %4 : vector<392x16xf32>
    %cst_5 = arith.constant 0.000000e+00 : f32
    %6 = vector.broadcast %cst_5 : f32 to vector<392x16xf32>
    %7 = arith.maximumf %5, %6 : vector<392x16xf32>
    %c0_6 = arith.constant 0 : index
    %c0_7 = arith.constant 0 : index
    %8 = vector.load %arg11[%c0_6, %c0_7] : memref<392x16xf32, #tpu.memory_space<vmem>>, vector<392x16xf32>
    tpu.vector_store %arg11[%c0_6, %c0_7], %7 {strides = array<i32>} : memref<392x16xf32, #tpu.memory_space<vmem>>, vector<392x16xf32>,
    %c0_8 = arith.constant 0 : index
    %c0_9 = arith.constant 0 : index
    %9 = vector.load %arg11[%c0_8, %c0_9] : memref<392x16xf32, #tpu.memory_space<vmem>>, vector<8x16xf32>
    %c8 = arith.constant 8 : index
    %c0_10 = arith.constant 0 : index
    %10 = vector.load %arg11[%c8, %c0_10] : memref<392x16xf32, #tpu.memory_space<vmem>>, vector<8x16xf32>
    %c16 = arith.constant 16 : index
    %c0_11 = arith.constant 0 : index
    %11 = vector.load %arg11[%c16, %c0_11] : memref<392x16xf32, #tpu.memory_space<vmem>>, vector<8x16xf32>
    %c24 = arith.constant 24 : index
    %c0_12 = arith.constant 0 : index
    %12 = vector.load %arg11[%c24, %c0_12] : memref<392x16xf32, #tpu.memory_space<vmem>>, vector<8x16xf32>
    %c56 = arith.constant 56 : index
    %c0_13 = arith.constant 0 : index
    %13 = vector.load %arg11[%c56, %c0_13] : memref<392x16xf32, #tpu.memory_space<vmem>>, vector<8x16xf32>
    %c64 = arith.constant 64 : index
    %c0_14 = arith.constant 0 : index
    %14 = vector.load %arg11[%c64, %c0_14] : memref<392x16xf32, #tpu.memory_space<vmem>>, vector<8x16xf32>
    %c72 = arith.constant 72 : index
    %c0_15 = arith.constant 0 : index
    %15 = vector.load %arg11[%c72, %c0_15] : memref<392x16xf32, #tpu.memory_space<vmem>>, vector<8x16xf32>
    %c80 = arith.constant 80 : index
    %c0_16 = arith.constant 0 : index
    %16 = vector.load %arg11[%c80, %c0_16] : memref<392x16xf32, #tpu.memory_space<vmem>>, vector<8x16xf32>
    %c112 = arith.constant 112 : index
    %c0_17 = arith.constant 0 : index
    %17 = vector.load %arg11[%c112, %c0_17] : memref<392x16xf32, #tpu.memory_space<vmem>>, vector<8x16xf32>
    %c120 = arith.constant 120 : index
    %c0_18 = arith.constant 0 : index
    %18 = vector.load %arg11[%c120, %c0_18] : memref<392x16xf32, #tpu.memory_space<vmem>>, vector<8x16xf32>
    %c128 = arith.constant 128 : index
    %c0_19 = arith.constant 0 : index
    %19 = vector.load %arg11[%c128, %c0_19] : memref<392x16xf32, #tpu.memory_space<vmem>>, vector<8x16xf32>
    %c136 = arith.constant 136 : index
    %c0_20 = arith.constant 0 : index
    %20 = vector.load %arg11[%c136, %c0_20] : memref<392x16xf32, #tpu.memory_space<vmem>>, vector<8x16xf32>
    %c168 = arith.constant 168 : index
    %c0_21 = arith.constant 0 : index
    %21 = vector.load %arg11[%c168, %c0_21] : memref<392x16xf32, #tpu.memory_space<vmem>>, vector<8x16xf32>
    %c176 = arith.constant 176 : index
    %c0_22 = arith.constant 0 : index
    %22 = vector.load %arg11[%c176, %c0_22] : memref<392x16xf32, #tpu.memory_space<vmem>>, vector<8x16xf32>
    %c184 = arith.constant 184 : index
    %c0_23 = arith.constant 0 : index
    %23 = vector.load %arg11[%c184, %c0_23] : memref<392x16xf32, #tpu.memory_space<vmem>>, vector<8x16xf32>
    %c192 = arith.constant 192 : index
    %c0_24 = arith.constant 0 : index
    %24 = vector.load %arg11[%c192, %c0_24] : memref<392x16xf32, #tpu.memory_space<vmem>>, vector<8x16xf32>
    %25 = tpu.concatenate %9, %10, %11, %12, %13, %14, %15, %16, %17, %18, %19, %20, %21, %22, %23, %24 in 1 : vector<8x16xf32>, vector<8x16xf32>, vector<8x16xf32>, vector<8x16xf32>, vector<8x16xf32>, vector<8x16xf32>, vector<8x16xf32>, vector<8x16xf32>, vector<8x16xf32>, vector<8x16xf32>, vector<8x16xf32>, vector<8x16xf32>, vector<8x16xf32>, vector<8x16xf32>, vector<8x16xf32>, vector<8x16xf32> -> vector<8x256xf32>
    %26 = arith.truncf %25 : vector<8x256xf32> to vector<8x256xbf16>
    %c0_25 = arith.constant 0 : index
    %c0_26 = arith.constant 0 : index
    %27 = vector.load %arg12[%c0_25, %c0_26] : memref<32x256xbf16, #tpu.memory_space<vmem>>, vector<8x256xbf16>
    tpu.vector_store %arg12[%c0_25, %c0_26], %26 {strides = array<i32>} : memref<32x256xbf16, #tpu.memory_space<vmem>>, vector<8x256xbf16>,
    %c16_27 = arith.constant 16 : index
    %c0_28 = arith.constant 0 : index
    %28 = vector.load %arg11[%c16_27, %c0_28] : memref<392x16xf32, #tpu.memory_space<vmem>>, vector<8x16xf32>
    %c24_29 = arith.constant 24 : index
    %c0_30 = arith.constant 0 : index
    %29 = vector.load %arg11[%c24_29, %c0_30] : memref<392x16xf32, #tpu.memory_space<vmem>>, vector<8x16xf32>
    %c32 = arith.constant 32 : index
    %c0_31 = arith.constant 0 : index
    %30 = vector.load %arg11[%c32, %c0_31] : memref<392x16xf32, #tpu.memory_space<vmem>>, vector<8x16xf32>
    %c40 = arith.constant 40 : index
    %c0_32 = arith.constant 0 : index
    %31 = vector.load %arg11[%c40, %c0_32] : memref<392x16xf32, #tpu.memory_space<vmem>>, vector<8x16xf32>
    %c72_33 = arith.constant 72 : index
    %c0_34 = arith.constant 0 : index
    %32 = vector.load %arg11[%c72_33, %c0_34] : memref<392x16xf32, #tpu.memory_space<vmem>>, vector<8x16xf32>
    %c80_35 = arith.constant 80 : index
    %c0_36 = arith.constant 0 : index
    %33 = vector.load %arg11[%c80_35, %c0_36] : memref<392x16xf32, #tpu.memory_space<vmem>>, vector<8x16xf32>
    %c88 = arith.constant 88 : index
    %c0_37 = arith.constant 0 : index
    %34 = vector.load %arg11[%c88, %c0_37] : memref<392x16xf32, #tpu.memory_space<vmem>>, vector<8x16xf32>
    %c96 = arith.constant 96 : index
    %c0_38 = arith.constant 0 : index
    %35 = vector.load %arg11[%c96, %c0_38] : memref<392x16xf32, #tpu.memory_space<vmem>>, vector<8x16xf32>
    %c128_39 = arith.constant 128 : index
    %c0_40 = arith.constant 0 : index
    %36 = vector.load %arg11[%c128_39, %c0_40] : memref<392x16xf32, #tpu.memory_space<vmem>>, vector<8x16xf32>
    %c136_41 = arith.constant 136 : index
    %c0_42 = arith.constant 0 : index
    %37 = vector.load %arg11[%c136_41, %c0_42] : memref<392x16xf32, #tpu.memory_space<vmem>>, vector<8x16xf32>
    %c144 = arith.constant 144 : index
    %c0_43 = arith.constant 0 : index
    %38 = vector.load %arg11[%c144, %c0_43] : memref<392x16xf32, #tpu.memory_space<vmem>>, vector<8x16xf32>
    %c152 = arith.constant 152 : index
    %c0_44 = arith.constant 0 : index
    %39 = vector.load %arg11[%c152, %c0_44] : memref<392x16xf32, #tpu.memory_space<vmem>>, vector<8x16xf32>
    %c184_45 = arith.constant 184 : index
    %c0_46 = arith.constant 0 : index
    %40 = vector.load %arg11[%c184_45, %c0_46] : memref<392x16xf32, #tpu.memory_space<vmem>>, vector<8x16xf32>
    %c192_47 = arith.constant 192 : index
    %c0_48 = arith.constant 0 : index
    %41 = vector.load %arg11[%c192_47, %c0_48] : memref<392x16xf32, #tpu.memory_space<vmem>>, vector<8x16xf32>
    %c200 = arith.constant 200 : index
    %c0_49 = arith.constant 0 : index
    %42 = vector.load %arg11[%c200, %c0_49] : memref<392x16xf32, #tpu.memory_space<vmem>>, vector<8x16xf32>
    %c208 = arith.constant 208 : index
    %c0_50 = arith.constant 0 : index
    %43 = vector.load %arg11[%c208, %c0_50] : memref<392x16xf32, #tpu.memory_space<vmem>>, vector<8x16xf32>
    %44 = tpu.concatenate %28, %29, %30, %31, %32, %33, %34, %35, %36, %37, %38, %39, %40, %41, %42, %43 in 1 : vector<8x16xf32>, vector<8x16xf32>, vector<8x16xf32>, vector<8x16xf32>, vector<8x16xf32>, vector<8x16xf32>, vector<8x16xf32>, vector<8x16xf32>, vector<8x16xf32>, vector<8x16xf32>, vector<8x16xf32>, vector<8x16xf32>, vector<8x16xf32>, vector<8x16xf32>, vector<8x16xf32>, vector<8x16xf32> -> vector<8x256xf32>
    %45 = arith.truncf %44 : vector<8x256xf32> to vector<8x256xbf16>
    %c8_51 = arith.constant 8 : index
    %c0_52 = arith.constant 0 : index
    %46 = vector.load %arg12[%c8_51, %c0_52] : memref<32x256xbf16, #tpu.memory_space<vmem>>, vector<8x256xbf16>
    tpu.vector_store %arg12[%c8_51, %c0_52], %45 {strides = array<i32>} : memref<32x256xbf16, #tpu.memory_space<vmem>>, vector<8x256xbf16>,
    %c112_53 = arith.constant 112 : index
    %c0_54 = arith.constant 0 : index
    %47 = vector.load %arg11[%c112_53, %c0_54] : memref<392x16xf32, #tpu.memory_space<vmem>>, vector<8x16xf32>
    %c120_55 = arith.constant 120 : index
    %c0_56 = arith.constant 0 : index
    %48 = vector.load %arg11[%c120_55, %c0_56] : memref<392x16xf32, #tpu.memory_space<vmem>>, vector<8x16xf32>
    %c128_57 = arith.constant 128 : index
    %c0_58 = arith.constant 0 : index
    %49 = vector.load %arg11[%c128_57, %c0_58] : memref<392x16xf32, #tpu.memory_space<vmem>>, vector<8x16xf32>
    %c136_59 = arith.constant 136 : index
    %c0_60 = arith.constant 0 : index
    %50 = vector.load %arg11[%c136_59, %c0_60] : memref<392x16xf32, #tpu.memory_space<vmem>>, vector<8x16xf32>
    %c168_61 = arith.constant 168 : index
    %c0_62 = arith.constant 0 : index
    %51 = vector.load %arg11[%c168_61, %c0_62] : memref<392x16xf32, #tpu.memory_space<vmem>>, vector<8x16xf32>
    %c176_63 = arith.constant 176 : index
    %c0_64 = arith.constant 0 : index
    %52 = vector.load %arg11[%c176_63, %c0_64] : memref<392x16xf32, #tpu.memory_space<vmem>>, vector<8x16xf32>
    %c184_65 = arith.constant 184 : index
    %c0_66 = arith.constant 0 : index
    %53 = vector.load %arg11[%c184_65, %c0_66] : memref<392x16xf32, #tpu.memory_space<vmem>>, vector<8x16xf32>
    %c192_67 = arith.constant 192 : index
    %c0_68 = arith.constant 0 : index
    %54 = vector.load %arg11[%c192_67, %c0_68] : memref<392x16xf32, #tpu.memory_space<vmem>>, vector<8x16xf32>
    %c224 = arith.constant 224 : index
    %c0_69 = arith.constant 0 : index
    %55 = vector.load %arg11[%c224, %c0_69] : memref<392x16xf32, #tpu.memory_space<vmem>>, vector<8x16xf32>
    %c232 = arith.constant 232 : index
    %c0_70 = arith.constant 0 : index
    %56 = vector.load %arg11[%c232, %c0_70] : memref<392x16xf32, #tpu.memory_space<vmem>>, vector<8x16xf32>
    %c240 = arith.constant 240 : index
    %c0_71 = arith.constant 0 : index
    %57 = vector.load %arg11[%c240, %c0_71] : memref<392x16xf32, #tpu.memory_space<vmem>>, vector<8x16xf32>
    %c248 = arith.constant 248 : index
    %c0_72 = arith.constant 0 : index
    %58 = vector.load %arg11[%c248, %c0_72] : memref<392x16xf32, #tpu.memory_space<vmem>>, vector<8x16xf32>
    %c280 = arith.constant 280 : index
    %c0_73 = arith.constant 0 : index
    %59 = vector.load %arg11[%c280, %c0_73] : memref<392x16xf32, #tpu.memory_space<vmem>>, vector<8x16xf32>
    %c288 = arith.constant 288 : index
    %c0_74 = arith.constant 0 : index
    %60 = vector.load %arg11[%c288, %c0_74] : memref<392x16xf32, #tpu.memory_space<vmem>>, vector<8x16xf32>
    %c296 = arith.constant 296 : index
    %c0_75 = arith.constant 0 : index
    %61 = vector.load %arg11[%c296, %c0_75] : memref<392x16xf32, #tpu.memory_space<vmem>>, vector<8x16xf32>
    %c304 = arith.constant 304 : index
    %c0_76 = arith.constant 0 : index
    %62 = vector.load %arg11[%c304, %c0_76] : memref<392x16xf32, #tpu.memory_space<vmem>>, vector<8x16xf32>
    %63 = tpu.concatenate %47, %48, %49, %50, %51, %52, %53, %54, %55, %56, %57, %58, %59, %60, %61, %62 in 1 : vector<8x16xf32>, vector<8x16xf32>, vector<8x16xf32>, vector<8x16xf32>, vector<8x16xf32>, vector<8x16xf32>, vector<8x16xf32>, vector<8x16xf32>, vector<8x16xf32>, vector<8x16xf32>, vector<8x16xf32>, vector<8x16xf32>, vector<8x16xf32>, vector<8x16xf32>, vector<8x16xf32>, vector<8x16xf32> -> vector<8x256xf32>
    %64 = arith.truncf %63 : vector<8x256xf32> to vector<8x256xbf16>
    %c16_77 = arith.constant 16 : index
    %c0_78 = arith.constant 0 : index
    %65 = vector.load %arg12[%c16_77, %c0_78] : memref<32x256xbf16, #tpu.memory_space<vmem>>, vector<8x256xbf16>
    tpu.vector_store %arg12[%c16_77, %c0_78], %64 {strides = array<i32>} : memref<32x256xbf16, #tpu.memory_space<vmem>>, vector<8x256xbf16>,
    %c128_79 = arith.constant 128 : index
    %c0_80 = arith.constant 0 : index
    %66 = vector.load %arg11[%c128_79, %c0_80] : memref<392x16xf32, #tpu.memory_space<vmem>>, vector<8x16xf32>
    %c136_81 = arith.constant 136 : index
    %c0_82 = arith.constant 0 : index
    %67 = vector.load %arg11[%c136_81, %c0_82] : memref<392x16xf32, #tpu.memory_space<vmem>>, vector<8x16xf32>
    %c144_83 = arith.constant 144 : index
    %c0_84 = arith.constant 0 : index
    %68 = vector.load %arg11[%c144_83, %c0_84] : memref<392x16xf32, #tpu.memory_space<vmem>>, vector<8x16xf32>
    %c152_85 = arith.constant 152 : index
    %c0_86 = arith.constant 0 : index
    %69 = vector.load %arg11[%c152_85, %c0_86] : memref<392x16xf32, #tpu.memory_space<vmem>>, vector<8x16xf32>
    %c184_87 = arith.constant 184 : index
    %c0_88 = arith.constant 0 : index
    %70 = vector.load %arg11[%c184_87, %c0_88] : memref<392x16xf32, #tpu.memory_space<vmem>>, vector<8x16xf32>
    %c192_89 = arith.constant 192 : index
    %c0_90 = arith.constant 0 : index
    %71 = vector.load %arg11[%c192_89, %c0_90] : memref<392x16xf32, #tpu.memory_space<vmem>>, vector<8x16xf32>
    %c200_91 = arith.constant 200 : index
    %c0_92 = arith.constant 0 : index
    %72 = vector.load %arg11[%c200_91, %c0_92] : memref<392x16xf32, #tpu.memory_space<vmem>>, vector<8x16xf32>
    %c208_93 = arith.constant 208 : index
    %c0_94 = arith.constant 0 : index
    %73 = vector.load %arg11[%c208_93, %c0_94] : memref<392x16xf32, #tpu.memory_space<vmem>>, vector<8x16xf32>
    %c240_95 = arith.constant 240 : index
    %c0_96 = arith.constant 0 : index
    %74 = vector.load %arg11[%c240_95, %c0_96] : memref<392x16xf32, #tpu.memory_space<vmem>>, vector<8x16xf32>
    %c248_97 = arith.constant 248 : index
    %c0_98 = arith.constant 0 : index
    %75 = vector.load %arg11[%c248_97, %c0_98] : memref<392x16xf32, #tpu.memory_space<vmem>>, vector<8x16xf32>
    %c256 = arith.constant 256 : index
    %c0_99 = arith.constant 0 : index
    %76 = vector.load %arg11[%c256, %c0_99] : memref<392x16xf32, #tpu.memory_space<vmem>>, vector<8x16xf32>
    %c264 = arith.constant 264 : index
    %c0_100 = arith.constant 0 : index
    %77 = vector.load %arg11[%c264, %c0_100] : memref<392x16xf32, #tpu.memory_space<vmem>>, vector<8x16xf32>
    %c296_101 = arith.constant 296 : index
    %c0_102 = arith.constant 0 : index
    %78 = vector.load %arg11[%c296_101, %c0_102] : memref<392x16xf32, #tpu.memory_space<vmem>>, vector<8x16xf32>
    %c304_103 = arith.constant 304 : index
    %c0_104 = arith.constant 0 : index
    %79 = vector.load %arg11[%c304_103, %c0_104] : memref<392x16xf32, #tpu.memory_space<vmem>>, vector<8x16xf32>
    %c312 = arith.constant 312 : index
    %c0_105 = arith.constant 0 : index
    %80 = vector.load %arg11[%c312, %c0_105] : memref<392x16xf32, #tpu.memory_space<vmem>>, vector<8x16xf32>
    %c320 = arith.constant 320 : index
    %c0_106 = arith.constant 0 : index
    %81 = vector.load %arg11[%c320, %c0_106] : memref<392x16xf32, #tpu.memory_space<vmem>>, vector<8x16xf32>
    %82 = tpu.concatenate %66, %67, %68, %69, %70, %71, %72, %73, %74, %75, %76, %77, %78, %79, %80, %81 in 1 : vector<8x16xf32>, vector<8x16xf32>, vector<8x16xf32>, vector<8x16xf32>, vector<8x16xf32>, vector<8x16xf32>, vector<8x16xf32>, vector<8x16xf32>, vector<8x16xf32>, vector<8x16xf32>, vector<8x16xf32>, vector<8x16xf32>, vector<8x16xf32>, vector<8x16xf32>, vector<8x16xf32>, vector<8x16xf32> -> vector<8x256xf32>
    %83 = arith.truncf %82 : vector<8x256xf32> to vector<8x256xbf16>
    %c24_107 = arith.constant 24 : index
    %c0_108 = arith.constant 0 : index
    %84 = vector.load %arg12[%c24_107, %c0_108] : memref<32x256xbf16, #tpu.memory_space<vmem>>, vector<8x256xbf16>
    tpu.vector_store %arg12[%c24_107, %c0_108], %83 {strides = array<i32>} : memref<32x256xbf16, #tpu.memory_space<vmem>>, vector<8x256xbf16>,
    %c0_109 = arith.constant 0 : index
    %c0_110 = arith.constant 0 : index
    %85 = vector.load %arg12[%c0_109, %c0_110] : memref<32x256xbf16, #tpu.memory_space<vmem>>, vector<32x256xbf16>
    %c0_111 = arith.constant 0 : index
    %c0_112 = arith.constant 0 : index
    %86 = vector.load %arg4[%c0_111, %c0_112] : memref<256x32xbf16, #tpu.memory_space<vmem>>, vector<256x32xbf16>
    %cst_113 = arith.constant dense<0.000000e+00> : vector<32x32xf32>
    %87 = tpu.matmul %85, %86, %cst_113 {dimension_numbers = #tpu.dot_dimension_numbers<[1], [0], [0], [1], [0, 0, 1, 1], [], []>} : vector<32x256xbf16>, vector<256x32xbf16>, vector<32x32xf32> -> vector<32x32xf32>
    %c0_114 = arith.constant 0 : index
    %c0_115 = arith.constant 0 : index
    %88 = vector.load %arg5[%c0_114, %c0_115] : memref<1x32xf32, #tpu.memory_space<vmem>>, vector<1x32xf32>
    %89 = vector.broadcast %88 : vector<1x32xf32> to vector<32x32xf32>
    %90 = arith.addf %87, %89 : vector<32x32xf32>
    %cst_116 = arith.constant 0.000000e+00 : f32
    %91 = vector.broadcast %cst_116 : f32 to vector<32x32xf32>
    %92 = arith.maximumf %90, %91 : vector<32x32xf32>
    %93 = vector.extract_strided_slice %92 {offsets = [0, 0], sizes = [8, 32], strides = [1, 1]} : vector<32x32xf32> to vector<8x32xf32>
    %94 = vector.extract_strided_slice %92 {offsets = [8, 0], sizes = [8, 32], strides = [1, 1]} : vector<32x32xf32> to vector<8x32xf32>
    %95 = vector.extract_strided_slice %92 {offsets = [16, 0], sizes = [8, 32], strides = [1, 1]} : vector<32x32xf32> to vector<8x32xf32>
    %96 = vector.extract_strided_slice %92 {offsets = [24, 0], sizes = [8, 32], strides = [1, 1]} : vector<32x32xf32> to vector<8x32xf32>
    %97 = tpu.concatenate %93, %94, %95, %96 in 1 : vector<8x32xf32>, vector<8x32xf32>, vector<8x32xf32>, vector<8x32xf32> -> vector<8x128xf32>
    %98 = arith.truncf %97 : vector<8x128xf32> to vector<8x128xbf16>
    %c0_117 = arith.constant 0 : index
    %c0_118 = arith.constant 0 : index
    %99 = vector.load %arg6[%c0_117, %c0_118] : memref<128x32xbf16, #tpu.memory_space<vmem>>, vector<128x32xbf16>
    %cst_119 = arith.constant dense<0.000000e+00> : vector<8x32xf32>
    %100 = tpu.matmul %98, %99, %cst_119 {dimension_numbers = #tpu.dot_dimension_numbers<[1], [0], [0], [1], [0, 0, 1, 1], [], []>} : vector<8x128xbf16>, vector<128x32xbf16>, vector<8x32xf32> -> vector<8x32xf32>
    %c0_120 = arith.constant 0 : index
    %c0_121 = arith.constant 0 : index
    %101 = vector.load %arg7[%c0_120, %c0_121] : memref<1x32xf32, #tpu.memory_space<vmem>>, vector<1x32xf32>
    %102 = vector.broadcast %101 : vector<1x32xf32> to vector<8x32xf32>
    %103 = arith.addf %100, %102 : vector<8x32xf32>
    %cst_122 = arith.constant 0.000000e+00 : f32
    %104 = vector.broadcast %cst_122 : f32 to vector<8x32xf32>
    %105 = arith.maximumf %103, %104 : vector<8x32xf32>
    %106 = arith.truncf %105 : vector<8x32xf32> to vector<8x32xbf16>
    %c0_123 = arith.constant 0 : index
    %c0_124 = arith.constant 0 : index
    %107 = vector.load %arg8[%c0_123, %c0_124] : memref<32x8xbf16, #tpu.memory_space<vmem>>, vector<32x8xbf16>
    %cst_125 = arith.constant dense<0.000000e+00> : vector<8x8xf32>
    %108 = tpu.matmul %106, %107, %cst_125 {dimension_numbers = #tpu.dot_dimension_numbers<[1], [0], [0], [1], [0, 0, 1, 1], [], []>} : vector<8x32xbf16>, vector<32x8xbf16>, vector<8x8xf32> -> vector<8x8xf32>
    %c0_126 = arith.constant 0 : index
    %c0_127 = arith.constant 0 : index
    %109 = vector.load %arg9[%c0_126, %c0_127] : memref<1x8xf32, #tpu.memory_space<vmem>>, vector<1x8xf32>
    %110 = vector.broadcast %109 : vector<1x8xf32> to vector<8x8xf32>
    %111 = arith.addf %108, %110 : vector<8x8xf32>
    %c0_128 = arith.constant 0 : index
    %c0_129 = arith.constant 0 : index
    %112 = vector.load %arg10[%c0_128, %c0_129] : memref<8x8xf32, #tpu.memory_space<vmem>>, vector<8x8xf32>
    tpu.vector_store %arg10[%c0_128, %c0_129], %111 {strides = array<i32>} : memref<8x8xf32, #tpu.memory_space<vmem>>, vector<8x8xf32>,
    return
  }
  func.func @transform_0(%arg0: i32) -> (i32, i32) {
    %c0_i32 = arith.constant 0 : i32
    %c0_i32_0 = arith.constant 0 : i32
    return %arg0, %c0_i32 : i32, i32
  }
  func.func @transform_1(%arg0: i32) -> (i32, i32) {
    %c0_i32 = arith.constant 0 : i32
    %c0_i32_0 = arith.constant 0 : i32
    %c0_i32_1 = arith.constant 0 : i32
    return %c0_i32, %c0_i32_0 : i32, i32
  }
  func.func @transform_2(%arg0: i32) -> (i32, i32) {
    %c0_i32 = arith.constant 0 : i32
    %c0_i32_0 = arith.constant 0 : i32
    %c0_i32_1 = arith.constant 0 : i32
    return %c0_i32, %c0_i32_0 : i32, i32
  }
  func.func @transform_3(%arg0: i32) -> (i32, i32) {
    %c0_i32 = arith.constant 0 : i32
    %c0_i32_0 = arith.constant 0 : i32
    %c0_i32_1 = arith.constant 0 : i32
    return %c0_i32, %c0_i32_0 : i32, i32
  }
  func.func @transform_4(%arg0: i32) -> (i32, i32) {
    %c0_i32 = arith.constant 0 : i32
    %c0_i32_0 = arith.constant 0 : i32
    %c0_i32_1 = arith.constant 0 : i32
    return %c0_i32, %c0_i32_0 : i32, i32
  }
  func.func @transform_5(%arg0: i32) -> (i32, i32) {
    %c0_i32 = arith.constant 0 : i32
    %c0_i32_0 = arith.constant 0 : i32
    %c0_i32_1 = arith.constant 0 : i32
    return %c0_i32, %c0_i32_0 : i32, i32
  }
  func.func @transform_6(%arg0: i32) -> (i32, i32) {
    %c0_i32 = arith.constant 0 : i32
    %c0_i32_0 = arith.constant 0 : i32
    %c0_i32_1 = arith.constant 0 : i32
    return %c0_i32, %c0_i32_0 : i32, i32
  }
  func.func @transform_7(%arg0: i32) -> (i32, i32) {
    %c0_i32 = arith.constant 0 : i32
    %c0_i32_0 = arith.constant 0 : i32
    %c0_i32_1 = arith.constant 0 : i32
    return %c0_i32, %c0_i32_0 : i32, i32
  }
  func.func @transform_8(%arg0: i32) -> (i32, i32) {
    %c0_i32 = arith.constant 0 : i32
    %c0_i32_0 = arith.constant 0 : i32
    %c0_i32_1 = arith.constant 0 : i32
    return %c0_i32, %c0_i32_0 : i32, i32
  }
  func.func @transform_9(%arg0: i32) -> (i32, i32) {
    %c0_i32 = arith.constant 0 : i32
    %c0_i32_0 = arith.constant 0 : i32
    return %arg0, %c0_i32 : i32, i32
  }
}

</mosaic_0001>

<bundles_post_ra>
// kernel: visual_q_network_forward.1
= control target key start
LH: loop header
LB: loop body
LE: loop exit
PB: predicated region body
PF: predicated region fallthrough
CT: control target
= control target key end

     0   :  { %v2057_v0 = vmov 0   ;;  %vm407_vm0 = vcmask 523264   ;;  %vm764_vm1 = vcmask 130048   ;;  %s2058_s13 = smov 16   ;;  %s2059_s16 = smov 32   ;;  %vm887_vm2 = vcmask 261120   ;;  %s2683_s1 = inlined_call_operand.vmem [shape: bf16[192,16], index: 1, kind: input, shape index: {}]   ;;  %s2684_s0 = inlined_call_operand.vmem [shape: bf16[392,192], index: 0, kind: input, shape index: {}]   ;;  %s2685_s2 = inlined_call_operand.vmem [shape: f32[1,16], index: 2, kind: input, shape index: {}]   ;;  %s2686_s3 = inlined_call_operand.vmem [shape: bf16[256,32], index: 3, kind: input, shape index: {}]   ;;  %s2687_s5 = inlined_call_operand.vmem [shape: bf16[128,32], index: 5, kind: input, shape index: {}]   ;;  %s2688_s4 = inlined_call_operand.vmem [shape: f32[1,32], index: 4, kind: input, shape index: {}]   ;;  %s2689_s7 = inlined_call_operand.vmem [shape: bf16[32,8], index: 7, kind: input, shape index: {}]   ;;  %s2690_s6 = inlined_call_operand.vmem [shape: f32[1,32], index: 6, kind: input, shape index: {}]   ;;  %s2691_s8 = inlined_call_operand.vmem [shape: f32[1,8], index: 8, kind: input, shape index: {}]   ;;  %s2692_s9 = inlined_call_operand.vmem [shape: f32[8,8], index: 9, kind: output, shape index: {}]  }
   0x1   :  { %483 = vmatprep.subr.bf16.mxu0 %v2057_v0  ;;  %v1944_v1 = vld [vmem:[%s2683_s1] sm:$0xff]   ;;  %1770 = vmatprep.subr.bf16.mxu1 %v2057_v0  ;;  %v1945_v2 = vld [vmem:[%s2683_s1 + $0x8] sm:$0xff]   ;;  %v1946_v3 = vld [vmem:[%s2683_s1 + $0x10] sm:$0xff]   ;;  %s2060_s22 = smov 48   ;;  %s2061_s25 = smov 64   ;;  %vm889_vm3 = vcmask 392192  }
   0x2   :  { %484 = vmatpush1.bf16.msra.mxu0 %v1944_v1  ;;  %1782 = vmatpush1.bf16.msra.mxu1 %v1944_v1  ;;  %v1947_v4 = vld [vmem:[%s2683_s1 + $0x18] sm:$0xff]   ;;  %v1958_v5 = vld [vmem:[%s2684_s0 + $0x4] ss:$8 sps:$4 sm:$0xff]   ;;  %v1950_v8 = vld [vmem:[%s2683_s1 + $0x30] sm:$0xff]   ;;  %s2062_s10 = smov 80   ;;  %s2063_s17 = smov 96  }
   0x3   :  { %485 = vmatprep.subr.bf16.mxu0 %v2057_v0  ;;  %1771 = vmatprep.subr.bf16.mxu1 %v2057_v0  ;;  %v1948_v6 = vld [vmem:[%s2683_s1 + $0x20] sm:$0xff]   ;;  %v1949_v7 = vld [vmem:[%s2683_s1 + $0x28] sm:$0xff]   ;;  %v1951_v9 = vld [vmem:[%s2683_s1 + $0x38] sm:$0xff]   ;;  %vm892_vm4 = vcmask 654336   ;;  %vm894_vm5 = vcmask 785408   ;;  %vm896_vm6 = vcmask 916480  }
   0x4   :  { %1647 = vmatprep.mubr.msk.bf16.mxu0 %vm407_vm0, %v1958_v5  ;;  %v1987_v10 = vld [vmem:[%s2684_s0 + $0x104] ss:$8 sps:$4 sm:$0xff]   ;;  %v1954_v13 = vld [vmem:[%s2683_s1 + $0x50] sm:$0xff]   ;;  %v1955_v14 = vld [vmem:[%s2683_s1 + $0x58] sm:$0xff]   ;;  %vm2066_vm7 = vmmov 0   ;;  %vm1578_vm8 = vcmask 64512  }
   0x5   :  { %1663 = vmatprep.mubr.msk.bf16.mxu1 %vm407_vm0, %v1987_v10  ;;  %v1952_v11 = vld [vmem:[%s2683_s1 + $0x40] sm:$0xff]   ;;  %v1953_v12 = vld [vmem:[%s2683_s1 + $0x48] sm:$0xff]   ;;  %v1959_v17 = vld [vmem:[%s2684_s0 + $0x14] ss:$8 sps:$4 sm:$0xff]  }
   0x6   :  { %486 = vmatpush1.bf16.msra.mxu0 %v1945_v2  ;;  %1783 = vmatpush1.bf16.msra.mxu1 %v1945_v2  ;;  %v1956_v15 = vld [vmem:[%s2684_s0] ss:$8 sps:$4 sm:$0xff]   ;;  %v1991_v18 = vld [vmem:[%s2684_s0 + $0x114] ss:$8 sps:$4 sm:$0xff]   ;;  %v1961_v19 = vld [vmem:[%s2684_s0 + $0x10] ss:$8 sps:$4 sm:$0xff]  }
   0x7   :  { %487 = vmatprep.subr.bf16.mxu0 %v2057_v0  ;;  %1772 = vmatprep.subr.bf16.mxu1 %v2057_v0  ;;  %v1985_v16 = vld [vmem:[%s2684_s0 + $0x100] ss:$8 sps:$4 sm:$0xff]   ;;  %v1994_v20 = vld [vmem:[%s2684_s0 + $0x110] ss:$8 sps:$4 sm:$0xff]   ;;  %v1962_v21 = vld [vmem:[%s2684_s0 + $0x24] ss:$8 sps:$4 sm:$0xff]  }
   0x8   :  { %v1997_v22 = vld [vmem:[%s2684_s0 + $0x124] ss:$8 sps:$4 sm:$0xff]   ;;  %v1964_v23 = vld [vmem:[%s2684_s0 + $0x20] ss:$8 sps:$4 sm:$0xff]   ;;  %v1965_v25 = vld [vmem:[%s2684_s0 + $0x34] ss:$8 sps:$4 sm:$0xff]  }
   0x9   :  { %v2000_v24 = vld [vmem:[%s2684_s0 + $0x120] ss:$8 sps:$4 sm:$0xff]   ;;  %v2003_v26 = vld [vmem:[%s2684_s0 + $0x134] ss:$8 sps:$4 sm:$0xff]   ;;  %v1967_v27 = vld [vmem:[%s2684_s0 + $0x30] ss:$8 sps:$4 sm:$0xff]  }
   0xa   :  { %488 = vmatpush1.bf16.msra.mxu0 %v1946_v3  ;;  %1784 = vmatpush1.bf16.msra.mxu1 %v1946_v3  ;;  %v2006_v28 = vld [vmem:[%s2684_s0 + $0x130] ss:$8 sps:$4 sm:$0xff]   ;;  %v1968_v29 = vld [vmem:[%s2684_s0 + $0x44] ss:$8 sps:$4 sm:$0xff]   ;;  %v1970_v31 = vld [vmem:[%s2684_s0 + $0x40] ss:$8 sps:$4 sm:$0xff]  }
   0xb   :  { %489 = vmatprep.subr.bf16.mxu0 %v2057_v0  ;;  %1773 = vmatprep.subr.bf16.mxu1 %v2057_v0  ;;  %v2009_v30 = vld [vmem:[%s2684_s0 + $0x144] ss:$8 sps:$4 sm:$0xff]   ;;  %v2012_v32 = vld [vmem:[%s2684_s0 + $0x140] ss:$8 sps:$4 sm:$0xff]   ;;  %v1971_v33 = vld [vmem:[%s2684_s0 + $0x54] ss:$8 sps:$4 sm:$0xff]  }
   0xc   :  { %v1973_v34 = vld [vmem:[%s2684_s0 + $0x50] ss:$8 sps:$4 sm:$0xff]   ;;  %v1974_v35 = vld [vmem:[%s2684_s0 + $0x64] ss:$8 sps:$4 sm:$0xff]   ;;  %v1976_v36 = vld [vmem:[%s2684_s0 + $0x60] ss:$8 sps:$4 sm:$0xff]  }
   0xd   :  { %v1977_v37 = vld [vmem:[%s2684_s0 + $0x74] ss:$8 sps:$4 sm:$0xff]   ;;  %v1979_v38 = vld [vmem:[%s2684_s0 + $0x70] ss:$8 sps:$4 sm:$0xff]   ;;  %v1980_v39 = vld [vmem:[%s2684_s0 + $0x84] ss:$8 sps:$4 sm:$0xff]  }
   0xe   :  { %490 = vmatpush1.bf16.msra.mxu0 %v1947_v4  ;;  %1785 = vmatpush1.bf16.msra.mxu1 %v1947_v4  ;;  %v1982_v40 = vld [vmem:[%s2684_s0 + $0x80] ss:$8 sps:$4 sm:$0xff]   ;;  %v1983_v41 = vld [vmem:[%s2684_s0 + $0x94] ss:$8 sps:$4 sm:$0xff]   ;;  %v1988_v42 = vld [vmem:[%s2684_s0 + $0x90] ss:$8 sps:$4 sm:$0xff]  }
   0xf   :  { %491 = vmatprep.subr.bf16.mxu0 %v2057_v0  ;;  %1774 = vmatprep.subr.bf16.mxu1 %v2057_v0  ;;  %v1989_v43 = vld [vmem:[%s2684_s0 + $0xa4] ss:$8 sps:$4 sm:$0xff]   ;;  %v1993_v44 = vld [vmem:[%s2684_s0 + $0xa0] ss:$8 sps:$4 sm:$0xff]   ;;  %v1995_v45 = vld [vmem:[%s2684_s0 + $0xb4] ss:$8 sps:$4 sm:$0xff]  }
  0x10   :  { %v1999_v46 = vld [vmem:[%s2684_s0 + $0xb0] ss:$8 sps:$4 sm:$0xff]   ;;  %v2001_v47 = vld [vmem:[%s2684_s0 + $0xc4] ss:$8 sps:$4 sm:$0xff]   ;;  %v2005_v48 = vld [vmem:[%s2684_s0 + $0xc0] ss:$8 sps:$4 sm:$0xff]  }
  0x11   :  { %v2007_v49 = vld [vmem:[%s2684_s0 + $0xd4] ss:$8 sps:$4 sm:$0xff]   ;;  %v2011_v50 = vld [vmem:[%s2684_s0 + $0xd0] ss:$8 sps:$4 sm:$0xff]   ;;  %v2013_v51 = vld [vmem:[%s2684_s0 + $0xe4] ss:$8 sps:$4 sm:$0xff]  }
  0x12   :  { %492 = vmatpush1.bf16.msra.mxu0 %v1948_v6  ;;  %1786 = vmatpush1.bf16.msra.mxu1 %v1948_v6  ;;  %v2015_v52 = vld [vmem:[%s2684_s0 + $0xe0] ss:$8 sps:$4 sm:$0xff]   ;;  %v2016_v53 = vld [vmem:[%s2684_s0 + $0xf4] ss:$8 sps:$4 sm:$0xff]   ;;  %v2018_v54 = vld [vmem:[%s2684_s0 + $0xf0] ss:$8 sps:$4 sm:$0xff]  }
  0x13   :  { %493 = vmatprep.subr.bf16.mxu0 %v2057_v0  ;;  %1775 = vmatprep.subr.bf16.mxu1 %v2057_v0  ;;  %v2327_v55 = vld [vmem:[%s2685_s2] ss:$0 sm:$0xff]  ;;  %s2064_s2 = smov 112  }
  0x16   :  { %494 = vmatpush1.bf16.msra.mxu0 %v1949_v7  ;;  %1787 = vmatpush1.bf16.msra.mxu1 %v1949_v7 }
  0x17   :  { %495 = vmatprep.subr.bf16.mxu0 %v2057_v0  ;;  %1776 = vmatprep.subr.bf16.mxu1 %v2057_v0 }
  0x1a   :  { %496 = vmatpush1.bf16.msra.mxu0 %v1950_v8  ;;  %1788 = vmatpush1.bf16.msra.mxu1 %v1950_v8 }
  0x1b   :  { %497 = vmatprep.subr.bf16.mxu0 %v2057_v0  ;;  %1777 = vmatprep.subr.bf16.mxu1 %v2057_v0 }
  0x1e   :  { %498 = vmatpush1.bf16.msra.mxu0 %v1951_v9  ;;  %1789 = vmatpush1.bf16.msra.mxu1 %v1951_v9 }
  0x1f   :  { %499 = vmatprep.subr.bf16.mxu0 %v2057_v0  ;;  %1778 = vmatprep.subr.bf16.mxu1 %v2057_v0 }
  0x22   :  { %500 = vmatpush1.bf16.msra.mxu0 %v1952_v11  ;;  %1790 = vmatpush1.bf16.msra.mxu1 %v1952_v11 }
  0x23   :  { %501 = vmatprep.subr.bf16.mxu0 %v2057_v0  ;;  %1779 = vmatprep.subr.bf16.mxu1 %v2057_v0 }
  0x26   :  { %502 = vmatpush1.bf16.msra.mxu0 %v1953_v12  ;;  %1791 = vmatpush1.bf16.msra.mxu1 %v1953_v12 }
  0x27   :  { %503 = vmatprep.subr.bf16.mxu0 %v2057_v0  ;;  %1780 = vmatprep.subr.bf16.mxu1 %v2057_v0 }
  0x2a   :  { %504 = vmatpush1.bf16.msra.mxu0 %v1954_v13  ;;  %1792 = vmatpush1.bf16.msra.mxu1 %v1954_v13 }
  0x2b   :  { %505 = vmatprep.subr.bf16.mxu0 %v2057_v0  ;;  %1781 = vmatprep.subr.bf16.mxu1 %v2057_v0 }
  0x2e   :  { %506 = vmatpush1.bf16.msra.mxu0 %v1955_v14  ;;  %1793 = vmatpush1.bf16.msra.mxu1 %v1955_v14 }
  0x31   :  { %516 = vmatmul.mubr.bf16.vlgmr.msra.gmra.mrb[0].mxu0 %v1956_v15  ;;  %644 = vmatmul.mubr.bf16.vlgmr.msra.gmra.mrb[0].mxu1 %v1985_v16 }
  0x32   :  { %1648 = vmatprep.mubr.msk.bf16.mxu0 %vm407_vm0, %v1959_v17  ;;  %1664 = vmatprep.mubr.msk.bf16.mxu1 %vm407_vm0, %v1991_v18 }
  0x39   :  { %524 = vmatmul.mubr.bf16.gmra.mrb[4].mxu0 %v1961_v19  ;;  %652 = vmatmul.mubr.bf16.gmra.mrb[4].mxu1 %v1994_v20 }
  0x3a   :  { %1649 = vmatprep.mubr.msk.bf16.mxu0 %vm407_vm0, %v1962_v21  ;;  %1665 = vmatprep.mubr.msk.bf16.mxu1 %vm407_vm0, %v1997_v22 }
  0x41   :  { %532 = vmatmul.mubr.bf16.gmra.mrb[8].mxu0 %v1964_v23  ;;  %660 = vmatmul.mubr.bf16.gmra.mrb[8].mxu1 %v2000_v24 }
  0x42   :  { %1650 = vmatprep.mubr.msk.bf16.mxu0 %vm407_vm0, %v1965_v25  ;;  %1666 = vmatprep.mubr.msk.bf16.mxu1 %vm407_vm0, %v2003_v26 }
  0x49   :  { %540 = vmatmul.mubr.bf16.gmra.mrb[12].mxu0 %v1967_v27  ;;  %668 = vmatmul.mubr.bf16.gmra.mrb[12].mxu1 %v2006_v28 }
  0x4a   :  { %1651 = vmatprep.mubr.msk.bf16.mxu0 %vm407_vm0, %v1968_v29  ;;  %1667 = vmatprep.mubr.msk.bf16.mxu1 %vm407_vm0, %v2009_v30 }
  0x51   :  { %548 = vmatmul.mubr.bf16.gmra.mrb[16].mxu0 %v1970_v31  ;;  %676 = vmatmul.mubr.bf16.gmra.mrb[16].mxu1 %v2012_v32 }
  0x52   :  { %1652 = vmatprep.mubr.msk.bf16.mxu0 %vm407_vm0, %v1971_v33 }
  0x59   :  { %556 = vmatmul.mubr.bf16.gmra.mrb[20].mxu0 %v1973_v34 }
  0x5a   :  { %1653 = vmatprep.mubr.msk.bf16.mxu0 %vm407_vm0, %v1974_v35 }
  0x61   :  { %564 = vmatmul.mubr.bf16.gmra.mrb[24].mxu0 %v1976_v36 }
  0x62   :  { %1654 = vmatprep.mubr.msk.bf16.mxu0 %vm407_vm0, %v1977_v37 }
  0x69   :  { %572 = vmatmul.mubr.bf16.gmra.mrb[28].mxu0 %v1979_v38 }
  0x6a   :  { %1655 = vmatprep.mubr.msk.bf16.mxu0 %vm407_vm0, %v1980_v39 }
  0x71   :  { %580 = vmatmul.mubr.bf16.gmra.mrb[32].mxu0 %v1982_v40 }
  0x72   :  { %1656 = vmatprep.mubr.msk.bf16.mxu0 %vm407_vm0, %v1983_v41 }
  0x79   :  { %588 = vmatmul.mubr.bf16.gmra.mrb[36].mxu0 %v1988_v42 }
  0x7a   :  { %1657 = vmatprep.mubr.msk.bf16.mxu0 %vm407_vm0, %v1989_v43 }
  0x81   :  { %596 = vmatmul.mubr.bf16.gmra.mrb[40].mxu0 %v1993_v44 }
  0x82   :  { %1658 = vmatprep.mubr.msk.bf16.mxu0 %vm407_vm0, %v1995_v45 }
  0x89   :  { %604 = vmatmul.mubr.bf16.gmra.mrb[44].mxu0 %v1999_v46 }
  0x8a   :  { %1659 = vmatprep.mubr.msk.bf16.mxu0 %vm407_vm0, %v2001_v47 }
  0x91   :  { %612 = vmatmul.mubr.bf16.gmra.mrb[48].mxu0 %v2005_v48 }
  0x92   :  { %1660 = vmatprep.mubr.msk.bf16.mxu0 %vm407_vm0, %v2007_v49 }
  0x99   :  { %620 = vmatmul.mubr.bf16.gmra.mrb[52].mxu0 %v2011_v50 }
  0x9a   :  { %1661 = vmatprep.mubr.msk.bf16.mxu0 %vm407_vm0, %v2013_v51 }
  0xa1   :  { %628 = vmatmul.mubr.bf16.gmra.mrb[56].mxu0 %v2015_v52 }
  0xa2   :  { %1662 = vmatprep.mubr.msk.bf16.mxu0 %vm407_vm0, %v2016_v53 }
  0xa9   :  { %636 = vmatmul.mubr.bf16.gmra.mrb[60].mxu0 %v2018_v54 }
 0x104   :  { %v517_v56 = vpop.f32.mrb[0].mxu0  ;;  %v645_v57 = vpop.f32.mrb[0].mxu1 }
 0x105   :  { %v518_v58 = vadd.f32 %v2327_v55, %v517_v56  ;;  %v519_v59 = vpop.f32.mrb[1].mxu0  ;;  %v646_v60 = vadd.f32 %v2327_v55, %v645_v57  ;;  %v647_v61 = vpop.f32.mrb[1].mxu1 }
 0x106   :  { %v520_v62 = vpop.f32.mrb[2].mxu0  ;;  %v648_v63 = vpop.f32.mrb[2].mxu1 }
 0x107   :  { %v715_v0 = vmax.f32 %v518_v58, 0.0  ;;  %v521_v1 = vadd.f32 %v2327_v55, %v520_v62  ;;  %v522_v2 = vpop.f32.mrb[3].mxu0  ;;  %v747_v3 = vmax.f32 %v646_v60, 0.0  ;;  %v649_v4 = vadd.f32 %v2327_v55, %v648_v63  ;;  %v650_v5 = vpop.f32.mrb[3].mxu1 }
 0x109   :  { %765 = vst.msk [vmem:[#allocation2] sm:$0xff] %vm764_vm1, %v715_v0  ;;  %v716_v6 = vmax.f32 %v521_v1, 0.0  ;;  %797 = vst.msk [vmem:[#allocation2 + $0x100] sm:$0xff] %vm764_vm1, %v747_v3  ;;  %v748_v7 = vmax.f32 %v649_v4, 0.0 }
 0x10b   :  { %766 = vst.msk [vmem:[#allocation2 + $0x8] sm:$0xff] %vm764_vm1, %v716_v6  ;;  %798 = vst.msk [vmem:[#allocation2 + $0x108] sm:$0xff] %vm764_vm1, %v748_v7 }
 0x10c   :  { %v525_v8 = vpop.f32.mrb[4].mxu0  ;;  %v653_v9 = vpop.f32.mrb[4].mxu1 }
 0x10d   :  { %v526_v10 = vadd.f32 %v2327_v55, %v525_v8  ;;  %v527_v11 = vpop.f32.mrb[5].mxu0  ;;  %v655_v12 = vpop.f32.mrb[5].mxu1 }
 0x10e   :  { %v528_v13 = vpop.f32.mrb[6].mxu0  ;;  %v656_v14 = vpop.f32.mrb[6].mxu1 }
 0x10f   :  { %v717_v15 = vmax.f32 %v526_v10, 0.0  ;;  %v529_v16 = vadd.f32 %v2327_v55, %v528_v13  ;;  %v530_v17 = vpop.f32.mrb[7].mxu0  ;;  %v657_v18 = vadd.f32 %v2327_v55, %v656_v14  ;;  %v658_v19 = vpop.f32.mrb[7].mxu1 }
 0x111   :  { %767 = vst.msk [vmem:[#allocation2 + $0x10] sm:$0xff] %vm764_vm1, %v717_v15  ;;  %v718_v20 = vmax.f32 %v529_v16, 0.0  ;;  %v750_v21 = vmax.f32 %v657_v18, 0.0 }
 0x113   :  { %768 = vst.msk [vmem:[#allocation2 + $0x18] sm:$0xff] %vm764_vm1, %v718_v20  ;;  %800 = vst.msk [vmem:[#allocation2 + $0x118] sm:$0xff] %vm764_vm1, %v750_v21 }
 0x114   :  { %v533_v22 = vpop.f32.mrb[8].mxu0  ;;  %v661_v23 = vpop.f32.mrb[8].mxu1 }
 0x115   :  { %v534_v24 = vadd.f32 %v2327_v55, %v533_v22  ;;  %v535_v25 = vpop.f32.mrb[9].mxu0  ;;  %v662_v26 = vadd.f32 %v2327_v55, %v661_v23  ;;  %v663_v27 = vpop.f32.mrb[9].mxu1 }
 0x116   :  { %v536_v28 = vpop.f32.mrb[10].mxu0  ;;  %v664_v29 = vpop.f32.mrb[10].mxu1 }
 0x117   :  { %v719_v30 = vmax.f32 %v534_v24, 0.0  ;;  %v537_v31 = vadd.f32 %v2327_v55, %v536_v28  ;;  %v538_v32 = vpop.f32.mrb[11].mxu0  ;;  %v751_v33 = vmax.f32 %v662_v26, 0.0  ;;  %v665_v34 = vadd.f32 %v2327_v55, %v664_v29  ;;  %v666_v35 = vpop.f32.mrb[11].mxu1 }
 0x118   :  { %v815_v32 = vld [vmem:[#allocation2 + $0x8] sm:$0xff] }
 0x119   :  { %769 = vst.msk [vmem:[#allocation2 + $0x20] sm:$0xff] %vm764_vm1, %v719_v30  ;;  %v720_v36 = vmax.f32 %v537_v31, 0.0  ;;  %801 = vst.msk [vmem:[#allocation2 + $0x120] sm:$0xff] %vm764_vm1, %v751_v33  ;;  %v752_v37 = vmax.f32 %v665_v34, 0.0  ;;  %v2019_v34 = vld [vmem:[%s2686_s3 + $0x40] sm:$0xff]  }
 0x11a   :  { %1702 = vmatprep.subr.bf16.mxu1 %v2019_v34 }
 0x11b   :  { %770 = vst.msk [vmem:[#allocation2 + $0x28] sm:$0xff] %vm764_vm1, %v720_v36  ;;  %802 = vst.msk [vmem:[#allocation2 + $0x128] sm:$0xff] %vm764_vm1, %v752_v37  ;;  %v2020_v37 = vld [vmem:[%s2686_s3] sm:$0xff]  }
 0x11c   :  { %v541_v38 = vpop.f32.mrb[12].mxu0  ;;  %v669_v39 = vpop.f32.mrb[12].mxu1  ;;  %1703 = vmatpush3.bf16.msra.mxu1 %v2020_v37 }
 0x11d   :  { %v543_v40 = vpop.f32.mrb[13].mxu0  ;;  %v670_v41 = vadd.f32 %v2327_v55, %v669_v39  ;;  %v671_v42 = vpop.f32.mrb[13].mxu1 }
 0x11e   :  { %v544_v43 = vpop.f32.mrb[14].mxu0  ;;  %v672_v44 = vpop.f32.mrb[14].mxu1  ;;  %v2388_v42 = vld [vmem:[#allocation2 + $0x10] sm:$0xff] }
 0x11f   :  { %v545_v45 = vadd.f32 %v2327_v55, %v544_v43  ;;  %v546_v46 = vpop.f32.mrb[15].mxu0  ;;  %v753_v47 = vmax.f32 %v670_v41, 0.0  ;;  %v673_v48 = vadd.f32 %v2327_v55, %v672_v44  ;;  %v674_v49 = vpop.f32.mrb[15].mxu1 }
 0x121   :  { %v722_v50 = vmax.f32 %v545_v45, 0.0  ;;  %803 = vst.msk [vmem:[#allocation2 + $0x130] sm:$0xff] %vm764_vm1, %v753_v47  ;;  %v754_v51 = vmax.f32 %v673_v48, 0.0  ;;  %v2021_v47 = vld [vmem:[%s2686_s3 + $0x48] sm:$0xff]  }
 0x122   :  { %1704 = vmatprep.subr.bf16.mxu1 %v2021_v47  ;;  %v2032_v47 = vld [vmem:[%s2684_s0 + $0x164] ss:$8 sps:$4 sm:$0xff]  }
 0x123   :  { %772 = vst.msk [vmem:[#allocation2 + $0x38] sm:$0xff] %vm764_vm1, %v722_v50  ;;  %804 = vst.msk [vmem:[#allocation2 + $0x138] sm:$0xff] %vm764_vm1, %v754_v51 }
 0x124   :  { %v549_v52 = vpop.f32.mrb[16].mxu0  ;;  %v677_v53 = vpop.f32.mrb[16].mxu1 }
 0x125   :  { %v550_v54 = vadd.f32 %v2327_v55, %v549_v52  ;;  %v551_v56 = vpop.f32.mrb[17].mxu0  ;;  %v678_v57 = vadd.f32 %v2327_v55, %v677_v53  ;;  %v679_v58 = vpop.f32.mrb[17].mxu1  ;;  %v910_v52 = vld [vmem:[#allocation2 + $0x18] sm:$0xff] }
 0x126   :  { %v552_v59 = vpop.f32.mrb[18].mxu0  ;;  %v680_v60 = vpop.f32.mrb[18].mxu1  ;;  %v2022_v56 = vld [vmem:[%s2686_s3 + $0x8] sm:$0xff]   ;;  %v1105_v58 = vld [vmem:[#allocation2 + $0x100] sm:$0xff] }
 0x127   :  { %v723_v61 = vmax.f32 %v550_v54, 0.0  ;;  %v553_v62 = vadd.f32 %v2327_v55, %v552_v59  ;;  %v554_v63 = vpop.f32.mrb[19].mxu0  ;;  %v755_v0 = vmax.f32 %v678_v57, 0.0  ;;  %v682_v1 = vpop.f32.mrb[19].mxu1  ;;  %1705 = vmatpush3.bf16.msra.mxu1 %v2022_v56 }
 0x128   :  { %v2023_v1 = vld [vmem:[%s2686_s3 + $0x50] sm:$0xff]  }
 0x129   :  { %773 = vst.msk [vmem:[#allocation2 + $0x40] sm:$0xff] %vm764_vm1, %v723_v61  ;;  %v724_v2 = vmax.f32 %v553_v62, 0.0  ;;  %805 = vst.msk [vmem:[#allocation2 + $0x140] sm:$0xff] %vm764_vm1, %v755_v0  ;;  %1706 = vmatprep.subr.bf16.mxu1 %v2023_v1  ;;  %v2037_v1 = vld [vmem:[%s2684_s0 + $0x174] ss:$8 sps:$4 sm:$0xff]  }
 0x12b   :  { %774 = vst.msk [vmem:[#allocation2 + $0x48] sm:$0xff] %vm764_vm1, %v724_v2  ;;  %v2024_v2 = vld [vmem:[%s2686_s3 + $0x10] sm:$0xff]  }
 0x12c   :  { %v557_v3 = vpop.f32.mrb[20].mxu0  ;;  %1707 = vmatpush3.bf16.msra.mxu1 %v2024_v2 }
 0x12d   :  { %v558_v4 = vadd.f32 %v2327_v55, %v557_v3  ;;  %v559_v5 = vpop.f32.mrb[21].mxu0 }
 0x12e   :  { %v560_v6 = vpop.f32.mrb[22].mxu0  ;;  %v912_v5 = vld [vmem:[#allocation2 + $0x28] sm:$0xff] }
 0x12f   :  { %v725_v7 = vmax.f32 %v558_v4, 0.0  ;;  %v561_v8 = vadd.f32 %v2327_v55, %v560_v6  ;;  %v562_v9 = vpop.f32.mrb[23].mxu0  ;;  %v911_v4 = vld [vmem:[#allocation2 + $0x20] sm:$0xff] }
 0x131   :  { %775 = vst.msk [vmem:[#allocation2 + $0x50] sm:$0xff] %vm764_vm1, %v725_v7  ;;  %v726_v10 = vmax.f32 %v561_v8, 0.0 }
 0x132   :  { %v913_v37 = vld [vmem:[#allocation2 + $0x48] sm:$0xff] }
 0x133   :  { %776 = vst.msk [vmem:[#allocation2 + $0x58] sm:$0xff] %vm764_vm1, %v726_v10 }
 0x134   :  { %v565_v11 = vpop.f32.mrb[24].mxu0 }
 0x135   :  { %v566_v12 = vadd.f32 %v2327_v55, %v565_v11  ;;  %v567_v13 = vpop.f32.mrb[25].mxu0  ;;  %v1106_v11 = vld [vmem:[#allocation2 + $0x108] sm:$0xff] }
 0x136   :  { %v568_v14 = vpop.f32.mrb[26].mxu0 }
 0x137   :  { %v727_v15 = vmax.f32 %v566_v12, 0.0  ;;  %v570_v16 = vpop.f32.mrb[27].mxu0 }
 0x139   :  { %777 = vst.msk [vmem:[#allocation2 + $0x60] sm:$0xff] %vm764_vm1, %v727_v15 }
 0x13c   :  { %v573_v17 = vpop.f32.mrb[28].mxu0 }
 0x13d   :  { %v574_v18 = vadd.f32 %v2327_v55, %v573_v17  ;;  %v575_v19 = vpop.f32.mrb[29].mxu0  ;;  %v818_v17 = vld [vmem:[#allocation2 + $0x38] sm:$0xff] }
 0x13e   :  { %v576_v20 = vpop.f32.mrb[30].mxu0  ;;  %v2025_v19 = vld [vmem:[%s2686_s3 + $0x58] sm:$0xff]  }
 0x13f   :  { %v729_v21 = vmax.f32 %v574_v18, 0.0  ;;  %v577_v22 = vadd.f32 %v2327_v55, %v576_v20  ;;  %v578_v23 = vpop.f32.mrb[31].mxu0  ;;  %1708 = vmatprep.subr.bf16.mxu1 %v2025_v19  ;;  %v915_v19 = vld [vmem:[#allocation2 + $0x58] sm:$0xff] }
 0x141   :  { %779 = vst.msk [vmem:[#allocation2 + $0x70] sm:$0xff] %vm764_vm1, %v729_v21  ;;  %v730_v24 = vmax.f32 %v577_v22, 0.0  ;;  %v1017_v22 = vld [vmem:[#allocation2 + $0x118] sm:$0xff] }
 0x143   :  { %780 = vst.msk [vmem:[#allocation2 + $0x78] sm:$0xff] %vm764_vm1, %v730_v24 }
 0x144   :  { %v581_v25 = vpop.f32.mrb[32].mxu0 }
 0x145   :  { %v582_v26 = vadd.f32 %v2327_v55, %v581_v25  ;;  %v583_v27 = vpop.f32.mrb[33].mxu0  ;;  %v2027_v25 = vld [vmem:[%s2684_s0 + $0x154] ss:$8 sps:$4 sm:$0xff]  }
 0x146   :  { %v584_v28 = vpop.f32.mrb[34].mxu0  ;;  %v2026_v27 = vld [vmem:[%s2686_s3 + $0x18] sm:$0xff]   ;;  %1668 = vmatprep.mubr.msk.bf16.mxu1 %vm407_vm0, %v2027_v25 }
 0x147   :  { %v731_v29 = vmax.f32 %v582_v26, 0.0  ;;  %v585_v30 = vadd.f32 %v2327_v55, %v584_v28  ;;  %v586_v31 = vpop.f32.mrb[35].mxu0  ;;  %v2029_v28 = vld [vmem:[%s2684_s0 + $0x150] ss:$8 sps:$4 sm:$0xff]   ;;  %1709 = vmatpush3.bf16.msra.mxu1 %v2026_v27 }
 0x148   :  { %684 = vmatmul.mubr.bf16.gmra.mrb[20].mxu1 %v2029_v28 }
 0x149   :  { %781 = vst.msk [vmem:[#allocation2 + $0x80] sm:$0xff] %vm764_vm1, %v731_v29  ;;  %v732_v33 = vmax.f32 %v585_v30, 0.0  ;;  %1669 = vmatprep.mubr.msk.bf16.mxu1 %vm407_vm0, %v2032_v47 }
 0x14a   :  { %v2379_v35 = vld [vmem:[#allocation2 + $0x78] sm:$0xff] }
 0x14b   :  { %782 = vst.msk [vmem:[#allocation2 + $0x88] sm:$0xff] %vm764_vm1, %v732_v33  ;;  %v1804_v36 = vpack.i.bf16 %v815_v32, %v2379_v35 }
 0x14c   :  { %v589_v38 = vpop.f32.mrb[36].mxu0 }
 0x14d   :  { %v590_v39 = vadd.f32 %v2327_v55, %v589_v38  ;;  %v591_v40 = vpop.f32.mrb[37].mxu0  ;;  %1805 = vrot.lane.b32.xlu1 %v1804_v36, %s2058_s13  ;;  %v819_v36 = vld [vmem:[#allocation2 + $0x40] sm:$0xff] }
 0x14e   :  { %v592_v41 = vpop.f32.mrb[38].mxu0 }
 0x14f   :  { %v733_v43 = vmax.f32 %v590_v39, 0.0  ;;  %v593_v44 = vadd.f32 %v2327_v55, %v592_v41  ;;  %v594_v45 = vpop.f32.mrb[39].mxu0 }
 0x150   :  { %v2391_v46 = vld [vmem:[#allocation2 + $0x80] sm:$0xff] }
 0x151   :  { %783 = vst.msk [vmem:[#allocation2 + $0x90] sm:$0xff] %vm764_vm1, %v733_v43  ;;  %v734_v48 = vmax.f32 %v593_v44, 0.0  ;;  %v1809_v49 = vpack.i.bf16 %v2388_v42, %v2391_v46  ;;  %v1107_v43 = vld [vmem:[#allocation2 + $0x128] sm:$0xff] }
 0x152   :  { %v2399_v50 = vld [vmem:[#allocation2 + $0x88] sm:$0xff] }
 0x153   :  { %784 = vst.msk [vmem:[#allocation2 + $0x98] sm:$0xff] %vm764_vm1, %v734_v48  ;;  %1810 = vrot.lane.b32.xlu0 %v1809_v49, %s2059_s16  ;;  %v1814_v54 = vpack.i.bf16 %v910_v52, %v2399_v50  ;;  %v2034_v49 = vld [vmem:[%s2684_s0 + $0x160] ss:$8 sps:$4 sm:$0xff]  }
 0x154   :  { %v597_v51 = vpop.f32.mrb[40].mxu0  ;;  %692 = vmatmul.mubr.bf16.gmra.mrb[24].mxu1 %v2034_v49 }
 0x155   :  { %v599_v53 = vpop.f32.mrb[41].mxu0  ;;  %1670 = vmatprep.mubr.msk.bf16.mxu1 %vm407_vm0, %v2037_v1  ;;  %v2536_v1 = vld [vmem:[#allocation2 + $0x70] sm:$0xff] }
 0x156   :  { %v600_v57 = vpop.f32.mrb[42].mxu0 }
 0x157   :  { %v601_v59 = vadd.f32 %v2327_v55, %v600_v57  ;;  %v602_v60 = vpop.f32.mrb[43].mxu0  ;;  %1815 = vrot.lane.b32.xlu0 %v1814_v54, %s2058_s13  ;;  %v2030_v57 = vld [vmem:[%s2686_s3 + $0x60] sm:$0xff]  }
 0x158   :  { %v1097_v61 = vld [vmem:[#allocation2 + $0x90] sm:$0xff]  ;;  %1710 = vmatprep.subr.bf16.mxu1 %v2030_v57 }
 0x159   :  { %v736_v62 = vmax.f32 %v601_v59, 0.0  ;;  %v1829_v63 = vpack.i.bf16 %v1097_v61, %v1105_v58  ;;  %v1824_v8 = vpack.i.bf16 %v911_v4, %v1097_v61  ;;  %v2031_v58 = vld [vmem:[%s2686_s3 + $0x20] sm:$0xff]   ;;  %v914_v59 = vld [vmem:[#allocation2 + $0x50] sm:$0xff]  ;;  %v2036_v4 = vld [vmem:[%s2686_s3 + $0x28] sm:$0xff]  }
 0x15a   :  { %v920_v0 = vld [vmem:[#allocation2 + $0x98] sm:$0xff]  ;;  %1711 = vmatpush3.bf16.msra.mxu1 %v2031_v58 }
 0x15b   :  { %786 = vst.msk [vmem:[#allocation2 + $0xa8] sm:$0xff] %vm764_vm1, %v736_v62  ;;  %1820 = vrot.lane.b32.xlu0 %v1814_v54, %s2060_s22  ;;  %1830 = vrot.lane.b32.xlu1 %v1829_v63, %s2059_s16  ;;  %v1834_v9 = vpack.i.bf16 %v912_v5, %v920_v0  ;;  %v1839_v16 = vpack.i.bf16 %v920_v0, %v1106_v11  ;;  %v1018_v54 = vld [vmem:[#allocation2 + $0x120] sm:$0xff]  ;;  %v2039_v5 = vld [vmem:[%s2684_s0 + $0x170] ss:$8 sps:$4 sm:$0xff]  }
 0x15c   :  { %v605_v3 = vpop.f32.mrb[44].mxu0  ;;  %700 = vmatmul.mubr.bf16.gmra.mrb[28].mxu1 %v2039_v5 }
 0x15d   :  { %v606_v6 = vadd.f32 %v2327_v55, %v605_v3  ;;  %v607_v7 = vpop.f32.mrb[45].mxu0  ;;  %v2035_v3 = vld [vmem:[%s2686_s3 + $0x68] sm:$0xff]  }
 0x15e   :  { %v608_v10 = vpop.f32.mrb[46].mxu0  ;;  %1712 = vmatprep.subr.bf16.mxu1 %v2035_v3 }
 0x15f   :  { %v737_v12 = vmax.f32 %v606_v6, 0.0  ;;  %v609_v13 = vadd.f32 %v2327_v55, %v608_v10  ;;  %v610_v14 = vpop.f32.mrb[47].mxu0  ;;  %1825 = vrot.lane.b32.xlu0 %v1824_v8, %s2059_s16  ;;  %1835 = vrot.lane.b32.xlu1 %v1834_v9, %s2060_s22  ;;  %v1108_v9 = vld [vmem:[#allocation2 + $0x130] sm:$0xff] }
 0x160   :  { %1713 = vmatpush3.bf16.msra.mxu1 %v2036_v4  ;;  %v81_v14 = vld [vmem:[%s2684_s0 + $0x180] sm:$0xff] }
 0x161   :  { %787 = vst.msk [vmem:[#allocation2 + $0xb0] sm:$0xff] %vm764_vm1, %v737_v12  ;;  %v738_v15 = vmax.f32 %v609_v13, 0.0 }
 0x162   :  { %v826_v18 = vld [vmem:[#allocation2 + $0xa8] sm:$0xff] }
 0x163   :  { %788 = vst.msk [vmem:[#allocation2 + $0xb8] sm:$0xff] %vm764_vm1, %v738_v15  ;;  %1840 = vrot.lane.b32.xlu1 %v1839_v16, %s2060_s22  ;;  %v1844_v20 = vpack.i.bf16 %v818_v17, %v826_v18  ;;  %v1849_v32 = vpack.i.bf16 %v826_v18, %v1017_v22  ;;  %v1634_v17 = vcombine.high %v81_v14, %v81_v14 }
 0x164   :  { %v613_v21 = vpop.f32.mrb[48].mxu0 }
 0x165   :  { %v614_v23 = vadd.f32 %v2327_v55, %v613_v21  ;;  %v615_v24 = vpop.f32.mrb[49].mxu0  ;;  %1845 = vrot.lane.b32.xlu0 %v1844_v20, %s2061_s25  ;;  %v2040_v20 = vld [vmem:[%s2686_s3 + $0x70] sm:$0xff]   ;;  %v1633_v21 = vcombine.low %v81_v14, %v81_v14  ;;  %1671 = vmatprep.mubr.msk.bf16.mxu1 %vm407_vm0, %v1634_v17 }
 0x166   :  { %v616_v26 = vpop.f32.mrb[50].mxu0  ;;  %1714 = vmatprep.subr.bf16.mxu1 %v2040_v20 }
 0x167   :  { %v739_v29 = vmax.f32 %v614_v23, 0.0  ;;  %v617_v30 = vadd.f32 %v2327_v55, %v616_v26  ;;  %v618_v31 = vpop.f32.mrb[51].mxu0  ;;  %v2042_v26 = vld [vmem:[%s2686_s3 + $0x30] sm:$0xff]   ;;  %708 = vmatmul.mubr.bf16.gmra.mrb[32].mxu1 %v1633_v21 }
 0x168   :  { %v827_v33 = vld [vmem:[#allocation2 + $0xb0] sm:$0xff]  ;;  %1715 = vmatpush3.bf16.msra.mxu1 %v2042_v26 }
 0x169   :  { %789 = vst.msk [vmem:[#allocation2 + $0xc0] sm:$0xff] %vm764_vm1, %v739_v29  ;;  %v740_v34 = vmax.f32 %v617_v30, 0.0  ;;  %1850 = vrot.lane.b32.xlu0 %v1849_v32, %s2061_s25  ;;  %v1854_v39 = vpack.i.bf16 %v819_v36, %v827_v33  ;;  %v1904_v60 = vpack.i.bf16 %v827_v33, %v1018_v54  ;;  %v916_v30 = vld [vmem:[#allocation2 + $0x60] sm:$0xff]  ;;  %v2045_v33 = vld [vmem:[%s2686_s3 + $0x38] sm:$0xff]  }
 0x16a   :  { %v921_v38 = vld [vmem:[#allocation2 + $0xb8] sm:$0xff] }
 0x16b   :  { %790 = vst.msk [vmem:[#allocation2 + $0xc8] sm:$0xff] %vm764_vm1, %v740_v34  ;;  %v1859_v40 = vpack.i.bf16 %v913_v37, %v921_v38  ;;  %v2453_v53 = vpack.i.bf16 %v921_v38, %v1107_v43  ;;  %v1109_v34 = vld [vmem:[#allocation2 + $0x138] sm:$0xff]  ;;  %v1110_v38 = vld [vmem:[#allocation2 + $0x140] sm:$0xff] }
 0x16c   :  { %v621_v41 = vpop.f32.mrb[52].mxu0 }
 0x16d   :  { %v622_v44 = vadd.f32 %v2327_v55, %v621_v41  ;;  %v623_v45 = vpop.f32.mrb[53].mxu0  ;;  %1855 = vrot.lane.b32.xlu0 %v1854_v39, %s2062_s10  ;;  %1860 = vrot.lane.b32.xlu1 %v1859_v40, %s2061_s25 }
 0x16e   :  { %v624_v48 = vpop.f32.mrb[54].mxu0 }
 0x16f   :  { %v741_v51 = vmax.f32 %v622_v44, 0.0  ;;  %v626_v52 = vpop.f32.mrb[55].mxu0 }
 0x170   :  { %v922_v56 = vld [vmem:[#allocation2 + $0xc0] sm:$0xff] }
 0x171   :  { %791 = vst.msk [vmem:[#allocation2 + $0xd0] sm:$0xff] %vm764_vm1, %v741_v51  ;;  %1865 = vrot.lane.b32.xlu0 %v1859_v40, %s2063_s17  ;;  %1870 = vrot.lane.b32.xlu1 %v2453_v53, %s2061_s25  ;;  %v1874_v61 = vpack.i.bf16 %v914_v59, %v922_v56  ;;  %v1884_v11 = vpack.i.bf16 %v922_v56, %v1108_v9 }
 0x172   :  { %v923_v13 = vld [vmem:[#allocation2 + $0xc8] sm:$0xff] }
 0x173   :  { %v1889_v25 = vpack.i.bf16 %v915_v19, %v923_v13  ;;  %v1899_v36 = vpack.i.bf16 %v923_v13, %v1109_v34 }
 0x174   :  { %v629_v62 = vpop.f32.mrb[56].mxu0 }
 0x175   :  { %v630_v63 = vadd.f32 %v2327_v55, %v629_v62  ;;  %v631_v0 = vpop.f32.mrb[57].mxu0  ;;  %1905 = vrot.lane.b32.xlu0 %v1904_v60, %s2062_s10  ;;  %1875 = vrot.lane.b32.xlu1 %v1874_v61, %s2062_s10 }
 0x176   :  { %v632_v2 = vpop.f32.mrb[58].mxu0 }
 0x177   :  { %v743_v6 = vmax.f32 %v630_v63, 0.0  ;;  %v633_v7 = vadd.f32 %v2327_v55, %v632_v2  ;;  %v634_v8 = vpop.f32.mrb[59].mxu0  ;;  %v814_v2 = vld [vmem:[#allocation2] sm:$0xff] }
 0x178   :  { %v924_v27 = vld [vmem:[#allocation2 + $0xd0] sm:$0xff] }
 0x179   :  { %793 = vst.msk [vmem:[#allocation2 + $0xe0] sm:$0xff] %vm764_vm1, %v743_v6  ;;  %v744_v10 = vmax.f32 %v633_v7, 0.0  ;;  %1880 = vrot.lane.b32.xlu1 %v1874_v61, %s2064_s2  ;;  %v1894_v32 = vpack.i.bf16 %v916_v30, %v924_v27  ;;  %v1909_v40 = vpack.i.bf16 %v924_v27, %v1110_v38 }
 0x17b   :  { %794 = vst.msk [vmem:[#allocation2 + $0xe8] sm:$0xff] %vm764_vm1, %v744_v10 }
 0x17c   :  { %v637_v12 = vpop.f32.mrb[60].mxu0 }
 0x17d   :  { %v638_v15 = vadd.f32 %v2327_v55, %v637_v12  ;;  %v639_v16 = vpop.f32.mrb[61].mxu0  ;;  %1885 = vrot.lane.b32.xlu1 %v1884_v11, %s2062_s10 }
 0x17e   :  { %v640_v18 = vpop.f32.mrb[62].mxu0 }
 0x17f   :  { %v745_v22 = vmax.f32 %v638_v15, 0.0  ;;  %v641_v23 = vadd.f32 %v2327_v55, %v640_v18  ;;  %v642_v24 = vpop.f32.mrb[63].mxu0  ;;  %v2044_v55 = vld [vmem:[%s2686_s3 + $0x78] sm:$0xff]  }
 0x180   :  { %1716 = vmatprep.subr.bf16.mxu1 %v2044_v55 }
 0x181   :  { %795 = vst.msk [vmem:[#allocation2 + $0xf0] sm:$0xff] %vm764_vm1, %v745_v22  ;;  %v746_v28 = vmax.f32 %v641_v23, 0.0  ;;  %1890 = vrot.lane.b32.xlu1 %v1889_v25, %s2063_s17  ;;  %1717 = vmatpush3.bf16.msra.mxu1 %v2045_v33 }
 0x182   :  { %v1014_v29 = vld [vmem:[#allocation2 + $0xe8] sm:$0xff] }
 0x183   :  { %796 = vst.msk [vmem:[#allocation2 + $0xf8] sm:$0xff] %vm764_vm1, %v746_v28  ;;  %v1914_v31 = vpack.i.bf16 %v2379_v35, %v1014_v29 }
 0x185   :  { %1915 = vrot.lane.b32.xlu0 %v1914_v31, %s2058_s13  ;;  %1895 = vrot.lane.b32.xlu1 %v1894_v32, %s2064_s2 }
 0x188   :  { %v2511_v37 = vld [vmem:[#allocation2 + $0xf0] sm:$0xff] }
 0x189   :  { %1900 = vrot.lane.b32.xlu1 %v1899_v36, %s2063_s17  ;;  %v1919_v35 = vpack.i.bf16 %v2391_v46, %v2511_v37 }
 0x18a   :  { %v1104_v39 = vld [vmem:[#allocation2 + $0xf8] sm:$0xff] }
 0x18b   :  { %1920 = vrot.lane.b32.xlu0 %v1919_v35, %s2059_s16  ;;  %v1924_v41 = vpack.i.bf16 %v2399_v50, %v1104_v39 }
 0x18d   :  { %1910 = vrot.lane.b32.xlu1 %v1909_v40, %s2064_s2 }
 0x18f   :  { %1925 = vrot.lane.b32.xlu0 %v1924_v41, %s2058_s13 }
 0x191   :  { %1940 = vrot.lane.b32.xlu1 %v1884_v11, %s2064_s2 }
 0x193   :  { %1930 = vrot.lane.b32.xlu0 %v1924_v41, %s2060_s22 }
 0x197   :  { %1935 = vrot.lane.b32.xlu0 %v2453_v53, %s2063_s17 }
 0x1bf   :  { %v1806_v45 = vpop.permute.xlu1 %1805 }
 0x1c0   :  { %v1808_v53 = vunpack.i.h.bf16 %v1806_v45  ;;  %v1807_v59 = vunpack.i.l.bf16 %v1806_v45 }
 0x1c2   :  { %v886_v6 = vsel %vm764_vm1, %v814_v2, %v1808_v53  ;;  %v898_v7 = vsel %vm764_vm1, %v2536_v1, %v1807_v59 }
 0x1c5   :  { %v1811_v43 = vpop.permute.xlu0 %1810 }
 0x1c6   :  { %v1813_v60 = vunpack.i.h.bf16 %v1811_v43  ;;  %v1812_v61 = vunpack.i.l.bf16 %v1811_v43 }
 0x1c8   :  { %v888_v10 = vsel %vm887_vm2, %v886_v6, %v1813_v60  ;;  %v899_v11 = vsel %vm887_vm2, %v898_v7, %v1812_v61 }
 0x1c9   :  { %v1816_v44 = vpop.permute.xlu0 %1815 }
 0x1ca   :  { %v1818_v25 = vunpack.i.h.bf16 %v1816_v44  ;;  %v1817_v26 = vunpack.i.l.bf16 %v1816_v44 }
 0x1cc   :  { %v981_v33 = vsel %vm764_vm1, %v2388_v42, %v1818_v25  ;;  %v988_v34 = vsel %vm764_vm1, %v2391_v46, %v1817_v26 }
 0x1cd   :  { %v1821_v47 = vpop.permute.xlu0 %1820  ;;  %v2524_v48 = vpop.permute.xlu1 %1830 }
 0x1ce   :  { %v1823_v62 = vunpack.i.h.bf16 %v1821_v47  ;;  %v1822_v63 = vunpack.i.l.bf16 %v1821_v47 }
 0x1d0   :  { %v890_v14 = vsel %vm889_vm3, %v888_v10, %v1823_v62  ;;  %v900_v15 = vsel %vm889_vm3, %v899_v11, %v1822_v63  ;;  %v1833_v11 = vunpack.i.h.bf16 %v2524_v48 }
 0x1d1   :  { %v1826_v49 = vpop.permute.xlu0 %1825  ;;  %v2526_v51 = vpop.permute.xlu1 %1835 }
 0x1d2   :  { %v1828_v29 = vunpack.i.h.bf16 %v1826_v49  ;;  %v1827_v30 = vunpack.i.l.bf16 %v1826_v49  ;;  %v1838_v36 = vunpack.i.h.bf16 %v2526_v51  ;;  %v1837_v38 = vunpack.i.l.bf16 %v2526_v51 }
 0x1d4   :  { %v982_v35 = vsel %vm887_vm2, %v981_v33, %v1828_v29  ;;  %v989_v39 = vsel %vm887_vm2, %v988_v34, %v1827_v30 }
 0x1d5   :  { %v2528_v50 = vpop.permute.xlu1 %1840 }
 0x1d7   :  { %v1846_v52 = vpop.permute.xlu0 %1845 }
 0x1d8   :  { %v1848_v3 = vunpack.i.h.bf16 %v1846_v52  ;;  %v1847_v4 = vunpack.i.l.bf16 %v1846_v52  ;;  %v983_v52 = vsel %vm889_vm3, %v982_v35, %v1838_v36 }
 0x1da   :  { %v891_v16 = vsel %vm407_vm0, %v890_v14, %v1848_v3  ;;  %v901_v17 = vsel %vm407_vm0, %v900_v15, %v1847_v4  ;;  %v1842_v14 = vunpack.i.l.bf16 %v2528_v50 }
 0x1db   :  { %v2530_v54 = vpop.permute.xlu0 %1850 }
 0x1df   :  { %v2532_v56 = vpop.permute.xlu1 %1860  ;;  %v1856_v57 = vpop.permute.xlu0 %1855 }
 0x1e0   :  { %v1858_v8 = vunpack.i.h.bf16 %v1856_v57  ;;  %v1857_v9 = vunpack.i.l.bf16 %v1856_v57  ;;  %v1863_v40 = vunpack.i.h.bf16 %v2532_v56  ;;  %v1862_v41 = vunpack.i.l.bf16 %v2532_v56 }
 0x1e1   :  { %v990_v57 = vsel %vm889_vm3, %v989_v39, %v1837_v38 }
 0x1e2   :  { %v893_v19 = vsel %vm892_vm4, %v891_v16, %v1858_v8  ;;  %v902_v20 = vsel %vm892_vm4, %v901_v17, %v1857_v9  ;;  %v984_v51 = vsel %vm407_vm0, %v983_v52, %v1863_v40  ;;  %v991_v53 = vsel %vm407_vm0, %v990_v57, %v1862_v41 }
 0x1e3   :  { %v2534_v58 = vpop.permute.xlu1 %1870  ;;  %v1866_v0 = vpop.permute.xlu0 %1865 }
 0x1e4   :  { %v1868_v12 = vunpack.i.h.bf16 %v1866_v0  ;;  %v1867_v13 = vunpack.i.l.bf16 %v1866_v0 }
 0x1e6   :  { %v895_v23 = vsel %vm894_vm5, %v893_v19, %v1868_v12  ;;  %v903_v24 = vsel %vm894_vm5, %v902_v20, %v1867_v13  ;;  %v1832_v12 = vunpack.i.l.bf16 %v2524_v48  ;;  %v1843_v13 = vunpack.i.h.bf16 %v2528_v50 }
 0x1e7   :  { %v1876_v5 = vpop.permute.xlu1 %1875  ;;  %v2565_v47 = vpop.permute.xlu0 %1905  ;;  %v1852_v19 = vunpack.i.l.bf16 %v2530_v54 }
 0x1e8   :  { %v1878_v44 = vunpack.i.h.bf16 %v1876_v5  ;;  %v1877_v45 = vunpack.i.l.bf16 %v1876_v5  ;;  %v1908_v48 = vunpack.i.h.bf16 %v2565_v47 }
 0x1ea   :  { %v985_v60 = vsel %vm892_vm4, %v984_v51, %v1878_v44  ;;  %v992_v56 = vsel %vm892_vm4, %v991_v53, %v1877_v45 }
 0x1eb   :  { %v1881_v18 = vpop.permute.xlu1 %1880 }
 0x1ec   :  { %v1883_v21 = vunpack.i.h.bf16 %v1881_v18  ;;  %v1882_v22 = vunpack.i.l.bf16 %v1881_v18  ;;  %v1853_v18 = vunpack.i.h.bf16 %v2530_v54 }
 0x1ee   :  { %v897_v27 = vsel %vm896_vm6, %v895_v23, %v1883_v21  ;;  %v904_v28 = vsel %vm896_vm6, %v903_v24, %v1882_v22  ;;  %v1873_v22 = vunpack.i.h.bf16 %v2534_v58  ;;  %v1872_v23 = vunpack.i.l.bf16 %v2534_v58 }
 0x1ef   :  { %v905_v55 = vpack.c.bf16 %v897_v27, %v897_v27  ;;  %v906_v31 = vpack.c.bf16 %v904_v28, %v904_v28  ;;  %v2553_v32 = vpop.permute.xlu1 %1885  ;;  %v1907_v24 = vunpack.i.l.bf16 %v2565_v47  ;;  %v1013_v27 = vld [vmem:[#allocation2 + $0xe0] sm:$0xff] }
 0x1f0   :  { %v1888_v25 = vunpack.i.h.bf16 %v2553_v32  ;;  %v1887_v26 = vunpack.i.l.bf16 %v2553_v32 }
 0x1f1   :  { %907 = vst [vmem:[#allocation3] sm:$0xf] %v905_v55  ;;  %908 = vst [vmem:[#allocation3 + $0x8] sm:$0xf] %v906_v31 }
 0x1f3   :  { %v1891_v43 = vpop.permute.xlu1 %1890 }
 0x1f4   :  { %v1893_v42 = vunpack.i.h.bf16 %v1891_v43  ;;  %v1892_v49 = vunpack.i.l.bf16 %v1891_v43 }
 0x1f6   :  { %v986_v63 = vsel %vm894_vm5, %v985_v60, %v1893_v42  ;;  %v993_v0 = vsel %vm894_vm5, %v992_v56, %v1892_v49 }
 0x1f7   :  { %v1896_v59 = vpop.permute.xlu1 %1895  ;;  %v1916_v2 = vpop.permute.xlu0 %1915 }
 0x1f8   :  { %v1898_v61 = vunpack.i.h.bf16 %v1896_v59  ;;  %v1897_v62 = vunpack.i.l.bf16 %v1896_v59  ;;  %v1918_v15 = vunpack.i.h.bf16 %v1916_v2  ;;  %v1917_v16 = vunpack.i.l.bf16 %v1916_v2 }
 0x1fa   :  { %v987_v3 = vsel %vm896_vm6, %v986_v63, %v1898_v61  ;;  %v994_v4 = vsel %vm896_vm6, %v993_v0, %v1897_v62  ;;  %v1077_v54 = vsel %vm764_vm1, %v2536_v1, %v1918_v15  ;;  %v1084_v30 = vsel %vm764_vm1, %v1013_v27, %v1917_v16 }
 0x1fb   :  { %v995_v5 = vpack.c.bf16 %v987_v3, %v987_v3  ;;  %v996_v6 = vpack.c.bf16 %v994_v4, %v994_v4  ;;  %v1901_v7 = vpop.permute.xlu1 %1900 }
 0x1fc   :  { %v1903_v55 = vunpack.i.h.bf16 %v1901_v7  ;;  %v1902_v31 = vunpack.i.l.bf16 %v1901_v7 }
 0x1fd   :  { %v999_v8 = vrot.slane %v995_v5, 4  ;;  %v1000_v9 = vrot.slane %v996_v6, 4  ;;  %v1921_v10 = vpop.permute.xlu0 %1920 }
 0x1fe   :  { %v1923_v20 = vunpack.i.h.bf16 %v1921_v10  ;;  %v1922_v21 = vunpack.i.l.bf16 %v1921_v10 }
 0x1ff   :  { %1003 = vst [vmem:[#allocation3] sm:$0xf0] %v999_v8  ;;  %1004 = vst [vmem:[#allocation3 + $0x8] sm:$0xf0] %v1000_v9  ;;  %v1911_v17 = vpop.permute.xlu1 %1910 }
 0x200   :  { %v1078_v58 = vsel %vm887_vm2, %v1077_v54, %v1923_v20  ;;  %v1085_v33 = vsel %vm887_vm2, %v1084_v30, %v1922_v21  ;;  %v1913_v38 = vunpack.i.h.bf16 %v1911_v17  ;;  %v1912_v35 = vunpack.i.l.bf16 %v1911_v17 }
 0x201   :  { %v1926_v50 = vpop.permute.xlu0 %1925 }
 0x202   :  { %v1928_v28 = vunpack.i.h.bf16 %v1926_v50  ;;  %v1927_v29 = vunpack.i.l.bf16 %v1926_v50 }
 0x203   :  { %v1941_v36 = vpop.permute.xlu1 %1940 }
 0x204   :  { %v1167_v34 = vsel %vm764_vm1, %v2391_v46, %v1928_v28  ;;  %v1174_v32 = vsel %vm764_vm1, %v2511_v37, %v1927_v29  ;;  %v1943_v49 = vunpack.i.h.bf16 %v1941_v36  ;;  %v1942_v52 = vunpack.i.l.bf16 %v1941_v36  ;;  %v2050_v36 = vld [vmem:[%s2687_s5 + $0x20] sm:$0xff]  }
 0x205   :  { %v1168_v39 = vsel %vm887_vm2, %v1167_v34, %v1833_v11  ;;  %v1175_v1 = vsel %vm887_vm2, %v1174_v32, %v1832_v12  ;;  %v1931_v40 = vpop.permute.xlu0 %1930  ;;  %v2048_v34 = vld [vmem:[%s2687_s5 + $0x10] sm:$0xff]   ;;  %v2049_v32 = vld [vmem:[%s2687_s5 + $0x18] sm:$0xff]  }
 0x206   :  { %v1169_v41 = vsel %vm889_vm3, %v1168_v39, %v1843_v13  ;;  %v1176_v43 = vsel %vm889_vm3, %v1175_v1, %v1842_v14  ;;  %v1933_v44 = vunpack.i.h.bf16 %v1931_v40  ;;  %v1932_v45 = vunpack.i.l.bf16 %v1931_v40  ;;  %v1192_v47 = vld [vmem:[#allocation3 + $0x8] sm:$0xff]  ;;  %v1191_v42 = vld [vmem:[#allocation3] sm:$0xff] }
 0x207   :  { %v1170_v46 = vsel %vm407_vm0, %v1169_v41, %v1873_v22  ;;  %v1177_v37 = vsel %vm407_vm0, %v1176_v43, %v1872_v23  ;;  %1362 = vmatprep.mubr.bf16.mxu1 %v1192_v47  ;;  %v2051_v43 = vld [vmem:[%s2687_s5 + $0x28] sm:$0xff]  }
 0x208   :  { %v1171_v57 = vsel %vm892_vm4, %v1170_v46, %v1888_v25  ;;  %v1178_v51 = vsel %vm892_vm4, %v1177_v37, %v1887_v26  ;;  %v1079_v53 = vsel %vm889_vm3, %v1078_v58, %v1933_v44  ;;  %v1086_v59 = vsel %vm889_vm3, %v1085_v33, %v1932_v45  ;;  %1363 = vmatmul.mubr.bf16.vlgmr.msra.gmra.mrb[36].mxu1 %v1191_v42  ;;  %v2046_v58 = vld [vmem:[%s2687_s5] sm:$0xff]   ;;  %v2047_v33 = vld [vmem:[%s2687_s5 + $0x8] sm:$0xff]   ;;  %v2052_v42 = vld [vmem:[%s2687_s5 + $0x30] sm:$0xff]  }
 0x209   :  { %v1172_v60 = vsel %vm894_vm5, %v1171_v57, %v1903_v55  ;;  %v1179_v56 = vsel %vm894_vm5, %v1178_v51, %v1902_v31  ;;  %v1080_v61 = vsel %vm407_vm0, %v1079_v53, %v1853_v18  ;;  %v1087_v62 = vsel %vm407_vm0, %v1086_v59, %v1852_v19  ;;  %v1936_v63 = vpop.permute.xlu0 %1935  ;;  %v2053_v37 = vld [vmem:[%s2687_s5 + $0x38] sm:$0xff]  }
 0x20a   :  { %v1173_v0 = vsel %vm896_vm6, %v1172_v60, %v1913_v38  ;;  %v1180_v2 = vsel %vm896_vm6, %v1179_v56, %v1912_v35  ;;  %v1938_v3 = vunpack.i.h.bf16 %v1936_v63  ;;  %v1937_v4 = vunpack.i.l.bf16 %v1936_v63  ;;  %v1672_v35 = vld [vmem:[%s2688_s4] ss:$0 sm:$0xff] }
 0x20b   :  { %v1181_v5 = vpack.c.bf16 %v1173_v0, %v1173_v0  ;;  %v1182_v6 = vpack.c.bf16 %v1180_v2, %v1180_v2  ;;  %v1081_v7 = vsel %vm892_vm4, %v1080_v61, %v1908_v48  ;;  %v1088_v8 = vsel %vm892_vm4, %v1087_v62, %v1907_v24 }
 0x20c   :  { %v1082_v9 = vsel %vm894_vm5, %v1081_v7, %v1938_v3  ;;  %v1089_v10 = vsel %vm894_vm5, %v1088_v8, %v1937_v4  ;;  %v2065_v31 = vmov 0.0   ;;  %v2054_v7 = vld [vmem:[%s2689_s7] sm:$0xff]  }
 0x20d   :  { %v1185_v11 = vrot.slane %v1181_v5, 4  ;;  %v1186_v12 = vrot.slane %v1182_v6, 4  ;;  %v1083_v13 = vsel %vm896_vm6, %v1082_v9, %v1943_v49  ;;  %v1090_v14 = vsel %vm896_vm6, %v1089_v10, %v1942_v52  ;;  %1742 = vmatprep.subr.bf16.mxu1 %v2065_v31  ;;  %v2055_v9 = vld [vmem:[%s2689_s7 + $0x8] sm:$0xff]   ;;  %v1689_v10 = vld [vmem:[%s2690_s6] ss:$0 sm:$0xff] }
 0x20e   :  { %v1091_v15 = vpack.c.bf16 %v1083_v13, %v1083_v13  ;;  %v1092_v16 = vpack.c.bf16 %v1090_v14, %v1090_v14  ;;  %1743 = vmatpush3.bf16.msra.mxu1 %v2046_v58 }
 0x20f   :  { %1189 = vst [vmem:[#allocation3 + $0x10] sm:$0xf0] %v1185_v11  ;;  %1190 = vst [vmem:[#allocation3 + $0x18] sm:$0xf0] %v1186_v12  ;;  %1744 = vmatprep.subr.bf16.mxu1 %v2065_v31 }
 0x210   :  { %1093 = vst [vmem:[#allocation3 + $0x10] sm:$0xf] %v1091_v15  ;;  %1094 = vst [vmem:[#allocation3 + $0x18] sm:$0xf] %v1092_v16 }
 0x212   :  { %1745 = vmatpush3.bf16.msra.mxu1 %v2047_v33 }
 0x213   :  { %1746 = vmatprep.subr.bf16.mxu1 %v2065_v31 }
 0x216   :  { %1747 = vmatpush3.bf16.msra.mxu1 %v2048_v34 }
 0x217   :  { %v1194_v17 = vld [vmem:[#allocation3 + $0x18] sm:$0xff]  ;;  %v1193_v18 = vld [vmem:[#allocation3 + $0x10] sm:$0xff]  ;;  %1748 = vmatprep.subr.bf16.mxu1 %v2065_v31 }
 0x218   :  { %1370 = vmatprep.mubr.bf16.mxu1 %v1194_v17 }
 0x219   :  { %1371 = vmatmul.mubr.bf16.gmra.mrb[40].mxu1 %v1193_v18  ;;  %v1698_v18 = vld [vmem:[%s2691_s8] ss:$0 sm:$0xff] }
 0x21a   :  { %1749 = vmatpush3.bf16.msra.mxu1 %v2049_v32  ;;  %1758 = vmatprep.mubr.msk.bf16.mxu1 %vm2066_vm7, %v2065_v31 }
 0x21b   :  { %v685_v19 = vpop.f32.mrb[20].mxu1  ;;  %1750 = vmatprep.subr.bf16.mxu1 %v2065_v31 }
 0x21c   :  { %v687_v20 = vpop.f32.mrb[21].mxu1 }
 0x21d   :  { %v688_v21 = vpop.f32.mrb[22].mxu1 }
 0x21e   :  { %v690_v22 = vpop.f32.mrb[23].mxu1  ;;  %1751 = vmatpush3.bf16.msra.mxu1 %v2050_v36 }
 0x21f   :  { %1752 = vmatprep.subr.bf16.mxu1 %v2065_v31 }
 0x222   :  { %1753 = vmatpush3.bf16.msra.mxu1 %v2051_v43 }
 0x223   :  { %1754 = vmatprep.subr.bf16.mxu1 %v2065_v31 }
 0x226   :  { %1755 = vmatpush3.bf16.msra.mxu1 %v2052_v42 }
 0x227   :  { %v693_v23 = vpop.f32.mrb[24].mxu1  ;;  %1756 = vmatprep.subr.bf16.mxu1 %v2065_v31 }
 0x228   :  { %v695_v48 = vpop.f32.mrb[25].mxu1 }
 0x229   :  { %v696_v24 = vpop.f32.mrb[26].mxu1 }
 0x22a   :  { %v698_v50 = vpop.f32.mrb[27].mxu1  ;;  %1757 = vmatpush3.bf16.msra.mxu1 %v2053_v37 }
 0x22b   :  { %1762 = vmatprep.subr.bf16.mxu1 %v2065_v31 }
 0x22f   :  { %v701_v25 = vpop.f32.mrb[28].mxu1 }
 0x230   :  { %v703_v26 = vpop.f32.mrb[29].mxu1 }
 0x231   :  { %v704_v27 = vpop.f32.mrb[30].mxu1 }
 0x232   :  { %v706_v28 = vpop.f32.mrb[31].mxu1 }
 0x23a   :  { %v709_v29 = vpop.f32.mrb[32].mxu1 }
 0x23b   :  { %v711_v54 = vpop.f32.mrb[33].mxu1 }
 0x23c   :  { %v712_v30 = vpop.f32.mrb[34].mxu1 }
 0x23d   :  { %v713_v55 = vpop.f32.mrb[35].mxu1 }
 0x2db   :  { %v1718_v38 = vpop.f32.mrb[36].mxu1 }
 0x2dc   :  { %v1719_v39 = vpop.f32.mrb[37].mxu1 }
 0x2dd   :  { %v1720_v1 = vadd.f32 %v1719_v39, %v1718_v38  ;;  %v1721_v40 = vpop.f32.mrb[38].mxu1 }
 0x2de   :  { %v1722_v41 = vpop.f32.mrb[39].mxu1 }
 0x2df   :  { %v1365_v44 = vadd.f32 %v1720_v1, %v1672_v35  ;;  %v1723_v45 = vadd.f32 %v1722_v41, %v1721_v40 }
 0x2e1   :  { %v1368_v47 = vadd.f32 %v1723_v45, %v1672_v35  ;;  %v1379_v0 = vmax.f32 %v1365_v44, 0.0 }
 0x2e3   :  { %v1380_v46 = vmax.f32 %v1368_v47, 0.0 }
 0x2e5   :  { %1384 = vrot.lane.b32.xlu0 %v1380_v46, %s2059_s16 }
 0x2ec   :  { %v1724_v49 = vpop.f32.mrb[40].mxu1 }
 0x2ed   :  { %v1725_v52 = vpop.f32.mrb[41].mxu1 }
 0x2ee   :  { %v1726_v57 = vadd.f32 %v1725_v52, %v1724_v49  ;;  %v1727_v51 = vpop.f32.mrb[42].mxu1 }
 0x2ef   :  { %v1728_v53 = vpop.f32.mrb[43].mxu1 }
 0x2f0   :  { %v1373_v59 = vadd.f32 %v1726_v57, %v1672_v35  ;;  %v1729_v60 = vadd.f32 %v1728_v53, %v1727_v51 }
 0x2f2   :  { %v1381_v56 = vmax.f32 %v1373_v59, 0.0  ;;  %v1376_v61 = vadd.f32 %v1729_v60, %v1672_v35 }
 0x2f4   :  { %v1382_v62 = vmax.f32 %v1376_v61, 0.0  ;;  %1388 = vrot.lane.b32.xlu1 %v1381_v56, %s2061_s25 }
 0x2f6   :  { %1392 = vrot.lane.b32.xlu0 %v1382_v62, %s2063_s17 }
 0x357   :  { %v1385_v63 = vpop.permute.xlu0 %1384 }
 0x358   :  { %v1395_v2 = vsel %vm887_vm2, %v1379_v0, %v1385_v63 }
 0x366   :  { %v1389_v3 = vpop.permute.xlu1 %1388 }
 0x367   :  { %v1396_v4 = vsel %vm407_vm0, %v1395_v2, %v1389_v3 }
 0x368   :  { %v1393_v5 = vpop.permute.xlu0 %1392 }
 0x369   :  { %v1397_v6 = vsel %vm894_vm5, %v1396_v4, %v1393_v5 }
 0x36a   :  { %v1398_v8 = vpack.c.bf16 %v1397_v6, %v1397_v6 }
 0x36c   :  { %1759 = vmatmul.mubr.bf16.vlgmr.msra.gmra.mrb[44].mxu1 %v1398_v8 }
 0x36d   :  { %1763 = vmatpush3.bf16.msra.mxu1 %v2054_v7  ;;  %1766 = vmatprep.mubr.msk.bf16.mxu1 %vm2066_vm7, %v2065_v31 }
 0x36e   :  { %1764 = vmatprep.subr.bf16.mxu1 %v2065_v31 }
 0x371   :  { %1765 = vmatpush3.bf16.msra.mxu1 %v2055_v9 }
 0x43f   :  { %v1504_v11 = vpop.f32.mrb[44].mxu1 }
 0x440   :  { %v1505_v12 = vadd.f32 %v1689_v10, %v1504_v11  ;;  %v1760_v13 = vpop.f32.mrb[45].mxu1 }
 0x441   :  { %v1507_v14 = vpop.f32.mrb[46].mxu1 }
 0x442   :  { %v1510_v15 = vmax.f32 %v1505_v12, 0.0  ;;  %v1761_v16 = vpop.f32.mrb[47].mxu1 }
 0x444   :  { %v1511_v17 = vpack.c.bf16 %v1510_v15, %v1510_v15 }
 0x446   :  { %1767 = vmatmul.mubr.msk.bf16.vlgmr.msra.gmra.mrb[48].mxu1 %vm887_vm2, %v1511_v17 }
 0x519   :  { %v1572_v19 = vpop.f32.mrb[48].mxu1 }
 0x51a   :  { %v1573_v20 = vadd.f32 %v1698_v18, %v1572_v19  ;;  %v1768_v21 = vpop.f32.mrb[49].mxu1 }
 0x51b   :  { %v1575_v22 = vpop.f32.mrb[50].mxu1 }
 0x51c   :  { %1579 = vst.msk [vmem:[%s2692_s9] sm:$0xff] %vm1578_vm8, %v1573_v20  ;;  %v1769_v23 = vpop.f32.mrb[51].mxu1 }

</bundles_post_ra>
